<compile_context>
chip_gen: v5e
topology: v5e:2x2
jax: 0.10.0
libtpu: 0.0.40
codegen_flags: <defaults>
</compile_context>

<pallas_src>
import math

import jax
import jax.numpy as jnp
from jax.experimental import pallas as pl
from jax.experimental.pallas import tpu as pltpu

# ----------------------------- small config ---------------------------------
B = 2            # batch
MAX_D = 8        # max_drug_seq
MAX_P = 16       # max_protein_seq (divisible by 4 for the two maxpools)
EMB = 32         # emb_size == feature_size (needed for the attention residual)
N_HEADS = 4
D_DIM = 8        # per-head dim
ATT_DIM = N_HEADS * D_DIM   # 32
CONV_CH = 32     # conv1/conv2 output channels (fixed by the torch module)
VOCAB_D = 23     # input_dim_drug
VOCAB_P = 26     # input_dim_target
N_OUTPUT = 2
OUT_PAD = 128    # lane-dense output slab width (sliced to N_OUTPUT in JAX)
LN_EPS = 1e-12
NEG_BIG = -1e9   # cross-(head,batch) block mask value


# ------------------------------ kernel helpers -------------------------------
def _layernorm(x, g, b):
    u = jnp.mean(x, axis=-1, keepdims=True)
    xc = x - u
    s = jnp.mean(xc * xc, axis=-1, keepdims=True)
    return g * (xc / jnp.sqrt(s + LN_EPS)) + b


def _maxpool2_rows(h):
    # MaxPool1d(kernel=2, stride=2) along the (time) sublane axis, computed
    # in-register: even/odd row selection done as two tiny MXU matmuls with
    # 0/1 selection matrices (avoids sublane-strided loads and scratch).
    n = h.shape[0] // 2
    r = jax.lax.broadcasted_iota(jnp.int32, (n, 2 * n), 0)
    c = jax.lax.broadcasted_iota(jnp.int32, (n, 2 * n), 1)
    s_even = (c == 2 * r).astype(h.dtype)
    s_odd = (c == 2 * r + 1).astype(h.dtype)
    return jnp.maximum(
        jnp.dot(s_even, h, preferred_element_type=jnp.float32),
        jnp.dot(s_odd, h, preferred_element_type=jnp.float32))


# ------------------------------ fused kernel ---------------------------------
def _ican_kernel(emb_d_ref, emb_p_ref, pos_d_ref, pos_p_ref,
                 g_d_ref, b_d_ref, g_p_ref, b_p_ref,
                 wq_ref, wkv_ref, wo_ref, mask_ref,
                 w1_ref, b1_ref, w2_ref, b2_ref,
                 wd1_ref, bd1_ref, wd2_ref, bd2_ref, wd3_ref, bd3_ref,
                 o_ref):
    f32 = jnp.float32

    # ---------- embeddings + LayerNorm (batch folded onto sublanes) ----------
    pos_d = jnp.concatenate([pos_d_ref[...]] * B, axis=0)          # (B*Ld, H)
    pos_p = jnp.concatenate([pos_p_ref[...]] * B, axis=0)          # (B*Lp, H)
    h1 = _layernorm(emb_d_ref[...] + pos_d, g_d_ref[...], b_d_ref[...])  # drug  (K/V)
    h2 = _layernorm(emb_p_ref[...] + pos_p, g_p_ref[...], b_p_ref[...])  # prot. (Q + residual)

    # ---------- multi-head cross attention: Q = h2, K = V = h1 ----------
    q = jnp.dot(h2, wq_ref[...], preferred_element_type=f32)        # (B*Lq, P)
    kv = jnp.dot(h1, wkv_ref[...], preferred_element_type=f32)      # (B*Lk, 2P)
    k = kv[:, :ATT_DIM]
    v = kv[:, ATT_DIM:]

    # heads along sublanes: row index = h*(B*L) + b*L + t
    qh = jnp.concatenate([q[:, h * D_DIM:(h + 1) * D_DIM] for h in range(N_HEADS)], axis=0)
    kh = jnp.concatenate([k[:, h * D_DIM:(h + 1) * D_DIM] for h in range(N_HEADS)], axis=0)
    vh = jnp.concatenate([v[:, h * D_DIM:(h + 1) * D_DIM] for h in range(N_HEADS)], axis=0)

    # one score matmul for all heads & batches; cross-(head,batch) entries and
    # padded keys are killed by the precomputed additive mask.
    s = jax.lax.dot_general(qh, kh, (((1,), (1,)), ((), ())),
                            preferred_element_type=f32) * (1.0 / math.sqrt(D_DIM))
    s = s + mask_ref[...]                                            # (nh*B*Lq, nh*B*Lk)
    m = jnp.max(s, axis=-1, keepdims=True)
    e = jnp.exp(s - m)
    attn = e / jnp.sum(e, axis=-1, keepdims=True)
    ctxh = jnp.dot(attn, vh, preferred_element_type=f32)             # (nh*B*Lq, dd)

    nbl = B * MAX_P
    ctx = jnp.concatenate([ctxh[h * nbl:(h + 1) * nbl, :] for h in range(N_HEADS)], axis=1)
    out2 = jnp.dot(ctx, wo_ref[...], preferred_element_type=f32) + h2  # residual (B*Lq, H)

    # ---------- CNN head (batch folded onto lane blocks of width 32) ----------
    L, L2, L4 = MAX_P, MAX_P // 2, MAX_P // 4
    conv_in = jnp.concatenate(
        [out2[b * MAX_P:(b + 1) * MAX_P, :] for b in range(B)], axis=1)   # (L, B*EMB)

    zpad = jnp.zeros((2, B * EMB), f32)
    xp1 = jnp.concatenate([zpad, conv_in, zpad], axis=0)                   # (L+4, B*EMB)
    taps1 = jnp.concatenate([xp1[kk:kk + L, :] for kk in range(5)], axis=1)  # (L, 5*B*EMB)
    hc1 = jnp.maximum(
        jnp.dot(taps1, w1_ref[...], preferred_element_type=f32) + b1_ref[...], 0.0)  # (L, B*32)
    hp1 = _maxpool2_rows(hc1)                                              # (L/2, B*32)

    zpad2 = jnp.zeros((2, B * CONV_CH), f32)
    xp2 = jnp.concatenate([zpad2, hp1, zpad2], axis=0)                     # (L/2+4, B*32)
    taps2 = jnp.concatenate([xp2[kk:kk + L2, :] for kk in range(5)], axis=1)  # (L/2, 5*B*32)
    hc2 = jnp.maximum(
        jnp.dot(taps2, w2_ref[...], preferred_element_type=f32) + b2_ref[...], 0.0)  # (L/2, B*32)
    hp2 = _maxpool2_rows(hc2)                                              # (L/4, B*32)

    # flatten per batch (feat[b, l*32 + c] = hp2[l, b*32 + c]) without reshapes
    feat = jnp.concatenate(
        [jnp.concatenate([hp2[l:l + 1, b * CONV_CH:(b + 1) * CONV_CH] for l in range(L4)],
                         axis=1)
         for b in range(B)], axis=0)                                        # (B, 32*L4)

    d1 = jnp.maximum(jnp.dot(feat, wd1_ref[...], preferred_element_type=f32) + bd1_ref[...], 0.0)
    d2 = jnp.maximum(jnp.dot(d1, wd2_ref[...], preferred_element_type=f32) + bd2_ref[...], 0.0)
    d3 = jnp.dot(d2, wd3_ref[...], preferred_element_type=f32) + bd3_ref[...]   # (B, 128) lane-dense
    o_ref[...] = d3


# ------------------------------- pallas wrapper -------------------------------
def _block_all(shape):
    nd = len(shape)
    return pl.BlockSpec(shape, lambda i, _nd=nd: (0,) * _nd)


def ican_forward(params, d_v, p_v, d_mask, p_mask):
    del p_mask  # only feeds the dead att_list_1 branch of the reference model

    # --- glue: embedding gathers + operand layout prep (no hot compute here) ---
    emb_d = jnp.take(params["demb_word"], d_v, axis=0).reshape(B * MAX_D, EMB)
    emb_p = jnp.take(params["pemb_word"], p_v, axis=0).reshape(B * MAX_P, EMB)

    # additive drug-key padding mask, expanded to the (head, batch)
    # block-diagonal layout used inside the kernel (rows: h,b,t ; cols: h,b,k).
    am1 = (1.0 - d_mask) * -10000.0                                   # (B, Ld)
    rq, ck = N_HEADS * B * MAX_P, N_HEADS * B * MAX_D
    r = jnp.arange(rq)
    c = jnp.arange(ck)
    r_h, r_b = r // (B * MAX_P), (r // MAX_P) % B
    c_h, c_b, c_k = c // (B * MAX_D), (c // MAX_D) % B, c % MAX_D
    same = (r_h[:, None] == c_h[None, :]) & (r_b[:, None] == c_b[None, :])
    mask_big = jnp.where(same, am1[c_b, c_k][None, :], NEG_BIG).astype(jnp.float32)

    # fused K|V projection weight
    wkv = jnp.concatenate([params["att2_wk"], params["att2_wv"]], axis=1)   # (H, 2P)

    # conv weights: per-tap block-diagonal over batch (lane blocks), taps stacked
    # along the contraction axis so each conv is a single matmul.
    eye_b = jnp.eye(B, dtype=jnp.float32)
    w1s = jnp.concatenate([jnp.kron(eye_b, params["conv1_w"][kk]) for kk in range(5)], axis=0)
    w2s = jnp.concatenate([jnp.kron(eye_b, params["conv2_w"][kk]) for kk in range(5)], axis=0)
    b1b = jnp.tile(params["conv1_b"].reshape(1, -1), (1, B))
    b2b = jnp.tile(params["conv2_b"].reshape(1, -1), (1, B))

    # lane-dense logits slab: pad dense_3 to 128 output lanes
    wd3p = jnp.zeros((CONV_CH, OUT_PAD), jnp.float32).at[:, :N_OUTPUT].set(params["dense3_w"])
    bd3p = jnp.zeros((1, OUT_PAD), jnp.float32).at[:, :N_OUTPUT].set(
        params["dense3_b"].reshape(1, -1))

    args = (
        emb_d, emb_p, params["demb_pos"], params["pemb_pos"],
        params["demb_gamma"].reshape(1, -1), params["demb_beta"].reshape(1, -1),
        params["pemb_gamma"].reshape(1, -1), params["pemb_beta"].reshape(1, -1),
        params["att2_wq"], wkv, params["att2_wo"], mask_big,
        w1s, b1b, w2s, b2b,
        params["dense1_w"], params["dense1_b"].reshape(1, -1),
        params["dense2_w"], params["dense2_b"].reshape(1, -1),
        wd3p, bd3p,
    )

    out_pad = pl.pallas_call(
        _ican_kernel,
        out_shape=jax.ShapeDtypeStruct((B, OUT_PAD), jnp.float32),
        grid=(1,),
        in_specs=[_block_all(a.shape) for a in args],
        out_specs=_block_all((B, OUT_PAD)),
        compiler_params=pltpu.CompilerParams(dimension_semantics=("arbitrary",)),
    )(*args)
    return out_pad[:, :N_OUTPUT]


# ------------------------------- parameters ----------------------------------
def init_params(key):
    ks = iter(jax.random.split(key, 24))

    def nrm(shape, scale=0.05):
        return scale * jax.random.normal(next(ks), shape, dtype=jnp.float32)

    L4 = MAX_P // 4
    return {
        # Embeddings
        "demb_word": nrm((VOCAB_D, EMB)),
        "demb_pos": nrm((MAX_D, EMB)),
        "demb_gamma": jnp.ones((EMB,), jnp.float32),
        "demb_beta": jnp.zeros((EMB,), jnp.float32),
        "pemb_word": nrm((VOCAB_P, EMB)),
        "pemb_pos": nrm((MAX_P, EMB)),
        "pemb_gamma": jnp.ones((EMB,), jnp.float32),
        "pemb_beta": jnp.zeros((EMB,), jnp.float32),
        # att_list_2: the only attention whose output reaches the returned CNN head
        # (att_list_1's output is dead in the reference forward -> not computed).
        "att2_wq": nrm((EMB, ATT_DIM)), "att2_wk": nrm((EMB, ATT_DIM)),
        "att2_wv": nrm((EMB, ATT_DIM)), "att2_wo": nrm((ATT_DIM, EMB)),
        # CNN
        "conv1_w": nrm((5, EMB, CONV_CH)), "conv1_b": nrm((CONV_CH,)),
        "conv2_w": nrm((5, CONV_CH, CONV_CH)), "conv2_b": nrm((CONV_CH,)),
        "dense1_w": nrm((CONV_CH * L4, 128)), "dense1_b": nrm((128,)),
        "dense2_w": nrm((128, 32)), "dense2_b": nrm((32,)),
        "dense3_w": nrm((32, N_OUTPUT)), "dense3_b": nrm((N_OUTPUT,)),
    }


# ----------------------------------- main -------------------------------------
if __name__ == "__main__":
    key = jax.random.PRNGKey(0)
    k_param, k_d, k_p = jax.random.split(key, 3)
    params = init_params(k_param)

    d_v = jax.random.randint(k_d, (B, MAX_D), 0, VOCAB_D, dtype=jnp.int32)
    p_v = jax.random.randint(k_p, (B, MAX_P), 0, VOCAB_P, dtype=jnp.int32)
    d_len = jnp.array([MAX_D, 5])
    p_len = jnp.array([MAX_P, 11])
    d_mask = (jnp.arange(MAX_D)[None, :] < d_len[:, None]).astype(jnp.float32)
    p_mask = (jnp.arange(MAX_P)[None, :] < p_len[:, None]).astype(jnp.float32)

    out = jax.jit(ican_forward)(params, d_v, p_v, d_mask, p_mask)
    out = jax.block_until_ready(out)
    assert out.shape == (B, N_OUTPUT), out.shape
    assert bool(jnp.all(jnp.isfinite(out)))
    print("KERNEL_OK")
</pallas_src>

<mosaic_0001>
module attributes {stable_mosaic.version = 11 : i64} {
  func.func @_ican_kernel(%arg0: i32, %arg1: memref<16x32xf32, #tpu.memory_space<vmem>>, %arg2: memref<32x32xf32, #tpu.memory_space<vmem>>, %arg3: memref<8x32xf32, #tpu.memory_space<vmem>>, %arg4: memref<16x32xf32, #tpu.memory_space<vmem>>, %arg5: memref<1x32xf32, #tpu.memory_space<vmem>>, %arg6: memref<1x32xf32, #tpu.memory_space<vmem>>, %arg7: memref<1x32xf32, #tpu.memory_space<vmem>>, %arg8: memref<1x32xf32, #tpu.memory_space<vmem>>, %arg9: memref<32x32xf32, #tpu.memory_space<vmem>>, %arg10: memref<32x64xf32, #tpu.memory_space<vmem>>, %arg11: memref<32x32xf32, #tpu.memory_space<vmem>>, %arg12: memref<128x64xf32, #tpu.memory_space<vmem>>, %arg13: memref<320x64xf32, #tpu.memory_space<vmem>>, %arg14: memref<1x64xf32, #tpu.memory_space<vmem>>, %arg15: memref<320x64xf32, #tpu.memory_space<vmem>>, %arg16: memref<1x64xf32, #tpu.memory_space<vmem>>, %arg17: memref<128x128xf32, #tpu.memory_space<vmem>>, %arg18: memref<1x128xf32, #tpu.memory_space<vmem>>, %arg19: memref<128x32xf32, #tpu.memory_space<vmem>>, %arg20: memref<1x32xf32, #tpu.memory_space<vmem>>, %arg21: memref<32x128xf32, #tpu.memory_space<vmem>>, %arg22: memref<1x128xf32, #tpu.memory_space<vmem>>, %arg23: memref<2x128xf32, #tpu.memory_space<vmem>>) attributes {dimension_semantics = [#tpu.dimension_semantics<arbitrary>], iteration_bounds = array<i64: 1>, scalar_prefetch = 0 : i64, scratch_operands = 0 : i64, tpu.core_type = #tpu.core_type<tc>, window_params = [{pipeline_mode = #tpu.pipeline_mode<synchronous>, transform_indices = @transform_0, window_bounds = array<i64: 16, 32>}, {pipeline_mode = #tpu.pipeline_mode<synchronous>, transform_indices = @transform_1, window_bounds = array<i64: 32, 32>}, {pipeline_mode = #tpu.pipeline_mode<synchronous>, transform_indices = @transform_2, window_bounds = array<i64: 8, 32>}, {pipeline_mode = #tpu.pipeline_mode<synchronous>, transform_indices = @transform_3, window_bounds = array<i64: 16, 32>}, {pipeline_mode = #tpu.pipeline_mode<synchronous>, transform_indices = @transform_4, window_bounds = array<i64: 1, 32>}, {pipeline_mode = #tpu.pipeline_mode<synchronous>, transform_indices = @transform_5, window_bounds = array<i64: 1, 32>}, {pipeline_mode = #tpu.pipeline_mode<synchronous>, transform_indices = @transform_6, window_bounds = array<i64: 1, 32>}, {pipeline_mode = #tpu.pipeline_mode<synchronous>, transform_indices = @transform_7, window_bounds = array<i64: 1, 32>}, {pipeline_mode = #tpu.pipeline_mode<synchronous>, transform_indices = @transform_8, window_bounds = array<i64: 32, 32>}, {pipeline_mode = #tpu.pipeline_mode<synchronous>, transform_indices = @transform_9, window_bounds = array<i64: 32, 64>}, {pipeline_mode = #tpu.pipeline_mode<synchronous>, transform_indices = @transform_10, window_bounds = array<i64: 32, 32>}, {pipeline_mode = #tpu.pipeline_mode<synchronous>, transform_indices = @transform_11, window_bounds = array<i64: 128, 64>}, {pipeline_mode = #tpu.pipeline_mode<synchronous>, transform_indices = @transform_12, window_bounds = array<i64: 320, 64>}, {pipeline_mode = #tpu.pipeline_mode<synchronous>, transform_indices = @transform_13, window_bounds = array<i64: 1, 64>}, {pipeline_mode = #tpu.pipeline_mode<synchronous>, transform_indices = @transform_14, window_bounds = array<i64: 320, 64>}, {pipeline_mode = #tpu.pipeline_mode<synchronous>, transform_indices = @transform_15, window_bounds = array<i64: 1, 64>}, {pipeline_mode = #tpu.pipeline_mode<synchronous>, transform_indices = @transform_16, window_bounds = array<i64: 128, 128>}, {pipeline_mode = #tpu.pipeline_mode<synchronous>, transform_indices = @transform_17, window_bounds = array<i64: 1, 128>}, {pipeline_mode = #tpu.pipeline_mode<synchronous>, transform_indices = @transform_18, window_bounds = array<i64: 128, 32>}, {pipeline_mode = #tpu.pipeline_mode<synchronous>, transform_indices = @transform_19, window_bounds = array<i64: 1, 32>}, {pipeline_mode = #tpu.pipeline_mode<synchronous>, transform_indices = @transform_20, window_bounds = array<i64: 32, 128>}, {pipeline_mode = #tpu.pipeline_mode<synchronous>, transform_indices = @transform_21, window_bounds = array<i64: 1, 128>}, {pipeline_mode = #tpu.pipeline_mode<synchronous>, transform_indices = @transform_22, window_bounds = array<i64: 2, 128>}]} {
    %c0 = arith.constant 0 : index
    %c0_0 = arith.constant 0 : index
    %0 = vector.load %arg3[%c0, %c0_0] : memref<8x32xf32, #tpu.memory_space<vmem>>, vector<8x32xf32>
    %1 = tpu.concatenate %0, %0 in 0 : vector<8x32xf32>, vector<8x32xf32> -> vector<16x32xf32>
    %c0_1 = arith.constant 0 : index
    %c0_2 = arith.constant 0 : index
    %2 = vector.load %arg4[%c0_1, %c0_2] : memref<16x32xf32, #tpu.memory_space<vmem>>, vector<16x32xf32>
    %3 = tpu.concatenate %2, %2 in 0 : vector<16x32xf32>, vector<16x32xf32> -> vector<32x32xf32>
    %c0_3 = arith.constant 0 : index
    %c0_4 = arith.constant 0 : index
    %4 = vector.load %arg1[%c0_3, %c0_4] : memref<16x32xf32, #tpu.memory_space<vmem>>, vector<16x32xf32>
    %5 = arith.addf %4, %1 : vector<16x32xf32>
    %c0_5 = arith.constant 0 : index
    %c0_6 = arith.constant 0 : index
    %6 = vector.load %arg5[%c0_5, %c0_6] : memref<1x32xf32, #tpu.memory_space<vmem>>, vector<1x32xf32>
    %c0_7 = arith.constant 0 : index
    %c0_8 = arith.constant 0 : index
    %7 = vector.load %arg6[%c0_7, %c0_8] : memref<1x32xf32, #tpu.memory_space<vmem>>, vector<1x32xf32>
    %cst = arith.constant dense<0.000000e+00> : vector<16xf32>
    %8 = vector.multi_reduction <add>, %5, %cst [1] : vector<16x32xf32> to vector<16xf32>
    %9 = vector.shape_cast %8 : vector<16xf32> to vector<16x1xf32>
    %cst_9 = arith.constant 3.200000e+01 : f32
    %10 = vector.broadcast %cst_9 : f32 to vector<16x1xf32>
    %11 = arith.divf %9, %10 : vector<16x1xf32>
    %12 = vector.broadcast %11 : vector<16x1xf32> to vector<16x32xf32>
    %13 = arith.subf %5, %12 : vector<16x32xf32>
    %14 = arith.mulf %13, %13 : vector<16x32xf32>
    %cst_10 = arith.constant dense<0.000000e+00> : vector<16xf32>
    %15 = vector.multi_reduction <add>, %14, %cst_10 [1] : vector<16x32xf32> to vector<16xf32>
    %16 = vector.shape_cast %15 : vector<16xf32> to vector<16x1xf32>
    %cst_11 = arith.constant 3.200000e+01 : f32
    %17 = vector.broadcast %cst_11 : f32 to vector<16x1xf32>
    %18 = arith.divf %16, %17 : vector<16x1xf32>
    %cst_12 = arith.constant 9.99999996E-13 : f32
    %19 = vector.broadcast %cst_12 : f32 to vector<16x1xf32>
    %20 = arith.addf %18, %19 : vector<16x1xf32>
    %21 = math.sqrt %20 : vector<16x1xf32>
    %22 = vector.broadcast %21 : vector<16x1xf32> to vector<16x32xf32>
    %23 = arith.divf %13, %22 : vector<16x32xf32>
    %24 = vector.broadcast %6 : vector<1x32xf32> to vector<16x32xf32>
    %25 = arith.mulf %24, %23 : vector<16x32xf32>
    %26 = vector.broadcast %7 : vector<1x32xf32> to vector<16x32xf32>
    %27 = arith.addf %25, %26 : vector<16x32xf32>
    %c0_13 = arith.constant 0 : index
    %c0_14 = arith.constant 0 : index
    %28 = vector.load %arg2[%c0_13, %c0_14] : memref<32x32xf32, #tpu.memory_space<vmem>>, vector<32x32xf32>
    %29 = arith.addf %28, %3 : vector<32x32xf32>
    %c0_15 = arith.constant 0 : index
    %c0_16 = arith.constant 0 : index
    %30 = vector.load %arg7[%c0_15, %c0_16] : memref<1x32xf32, #tpu.memory_space<vmem>>, vector<1x32xf32>
    %c0_17 = arith.constant 0 : index
    %c0_18 = arith.constant 0 : index
    %31 = vector.load %arg8[%c0_17, %c0_18] : memref<1x32xf32, #tpu.memory_space<vmem>>, vector<1x32xf32>
    %cst_19 = arith.constant dense<0.000000e+00> : vector<32xf32>
    %32 = vector.multi_reduction <add>, %29, %cst_19 [1] : vector<32x32xf32> to vector<32xf32>
    %33 = vector.shape_cast %32 : vector<32xf32> to vector<32x1xf32>
    %cst_20 = arith.constant 3.200000e+01 : f32
    %34 = vector.broadcast %cst_20 : f32 to vector<32x1xf32>
    %35 = arith.divf %33, %34 : vector<32x1xf32>
    %36 = vector.broadcast %35 : vector<32x1xf32> to vector<32x32xf32>
    %37 = arith.subf %29, %36 : vector<32x32xf32>
    %38 = arith.mulf %37, %37 : vector<32x32xf32>
    %cst_21 = arith.constant dense<0.000000e+00> : vector<32xf32>
    %39 = vector.multi_reduction <add>, %38, %cst_21 [1] : vector<32x32xf32> to vector<32xf32>
    %40 = vector.shape_cast %39 : vector<32xf32> to vector<32x1xf32>
    %cst_22 = arith.constant 3.200000e+01 : f32
    %41 = vector.broadcast %cst_22 : f32 to vector<32x1xf32>
    %42 = arith.divf %40, %41 : vector<32x1xf32>
    %cst_23 = arith.constant 9.99999996E-13 : f32
    %43 = vector.broadcast %cst_23 : f32 to vector<32x1xf32>
    %44 = arith.addf %42, %43 : vector<32x1xf32>
    %45 = math.sqrt %44 : vector<32x1xf32>
    %46 = vector.broadcast %45 : vector<32x1xf32> to vector<32x32xf32>
    %47 = arith.divf %37, %46 : vector<32x32xf32>
    %48 = vector.broadcast %30 : vector<1x32xf32> to vector<32x32xf32>
    %49 = arith.mulf %48, %47 : vector<32x32xf32>
    %50 = vector.broadcast %31 : vector<1x32xf32> to vector<32x32xf32>
    %51 = arith.addf %49, %50 : vector<32x32xf32>
    %c0_24 = arith.constant 0 : index
    %c0_25 = arith.constant 0 : index
    %52 = vector.load %arg9[%c0_24, %c0_25] : memref<32x32xf32, #tpu.memory_space<vmem>>, vector<32x32xf32>
    %cst_26 = arith.constant dense<0.000000e+00> : vector<32x32xf32>
    %53 = tpu.matmul %51, %52, %cst_26 {dimension_numbers = #tpu.dot_dimension_numbers<[1], [0], [0], [1], [0, 0, 1, 1], [], []>} : vector<32x32xf32>, vector<32x32xf32>, vector<32x32xf32> -> vector<32x32xf32>
    %c0_27 = arith.constant 0 : index
    %c0_28 = arith.constant 0 : index
    %54 = vector.load %arg10[%c0_27, %c0_28] : memref<32x64xf32, #tpu.memory_space<vmem>>, vector<32x64xf32>
    %cst_29 = arith.constant dense<0.000000e+00> : vector<16x64xf32>
    %55 = tpu.matmul %27, %54, %cst_29 {dimension_numbers = #tpu.dot_dimension_numbers<[1], [0], [0], [1], [0, 0, 1, 1], [], []>} : vector<16x32xf32>, vector<32x64xf32>, vector<16x64xf32> -> vector<16x64xf32>
    %56 = vector.extract_strided_slice %55 {offsets = [0, 0], sizes = [16, 32], strides = [1, 1]} : vector<16x64xf32> to vector<16x32xf32>
    %57 = vector.extract_strided_slice %55 {offsets = [0, 32], sizes = [16, 32], strides = [1, 1]} : vector<16x64xf32> to vector<16x32xf32>
    %58 = vector.extract_strided_slice %53 {offsets = [0, 0], sizes = [32, 8], strides = [1, 1]} : vector<32x32xf32> to vector<32x8xf32>
    %59 = vector.extract_strided_slice %53 {offsets = [0, 8], sizes = [32, 8], strides = [1, 1]} : vector<32x32xf32> to vector<32x8xf32>
    %60 = vector.extract_strided_slice %53 {offsets = [0, 16], sizes = [32, 8], strides = [1, 1]} : vector<32x32xf32> to vector<32x8xf32>
    %61 = vector.extract_strided_slice %53 {offsets = [0, 24], sizes = [32, 8], strides = [1, 1]} : vector<32x32xf32> to vector<32x8xf32>
    %62 = tpu.concatenate %58, %59, %60, %61 in 0 : vector<32x8xf32>, vector<32x8xf32>, vector<32x8xf32>, vector<32x8xf32> -> vector<128x8xf32>
    %63 = vector.extract_strided_slice %56 {offsets = [0, 0], sizes = [16, 8], strides = [1, 1]} : vector<16x32xf32> to vector<16x8xf32>
    %64 = vector.extract_strided_slice %56 {offsets = [0, 8], sizes = [16, 8], strides = [1, 1]} : vector<16x32xf32> to vector<16x8xf32>
    %65 = vector.extract_strided_slice %56 {offsets = [0, 16], sizes = [16, 8], strides = [1, 1]} : vector<16x32xf32> to vector<16x8xf32>
    %66 = vector.extract_strided_slice %56 {offsets = [0, 24], sizes = [16, 8], strides = [1, 1]} : vector<16x32xf32> to vector<16x8xf32>
    %67 = tpu.concatenate %63, %64, %65, %66 in 0 : vector<16x8xf32>, vector<16x8xf32>, vector<16x8xf32>, vector<16x8xf32> -> vector<64x8xf32>
    %68 = vector.extract_strided_slice %57 {offsets = [0, 0], sizes = [16, 8], strides = [1, 1]} : vector<16x32xf32> to vector<16x8xf32>
    %69 = vector.extract_strided_slice %57 {offsets = [0, 8], sizes = [16, 8], strides = [1, 1]} : vector<16x32xf32> to vector<16x8xf32>
    %70 = vector.extract_strided_slice %57 {offsets = [0, 16], sizes = [16, 8], strides = [1, 1]} : vector<16x32xf32> to vector<16x8xf32>
    %71 = vector.extract_strided_slice %57 {offsets = [0, 24], sizes = [16, 8], strides = [1, 1]} : vector<16x32xf32> to vector<16x8xf32>
    %72 = tpu.concatenate %68, %69, %70, %71 in 0 : vector<16x8xf32>, vector<16x8xf32>, vector<16x8xf32>, vector<16x8xf32> -> vector<64x8xf32>
    %cst_30 = arith.constant dense<0.000000e+00> : vector<128x64xf32>
    %73 = tpu.matmul %62, %67, %cst_30 {dimension_numbers = #tpu.dot_dimension_numbers<[1], [1], [0], [0], [0, 0, 1, 0], [], []>} : vector<128x8xf32>, vector<64x8xf32>, vector<128x64xf32> -> vector<128x64xf32>
    %cst_31 = arith.constant 0.353553385 : f32
    %74 = vector.broadcast %cst_31 : f32 to vector<128x64xf32>
    %75 = arith.mulf %73, %74 : vector<128x64xf32>
    %c0_32 = arith.constant 0 : index
    %c0_33 = arith.constant 0 : index
    %76 = vector.load %arg12[%c0_32, %c0_33] : memref<128x64xf32, #tpu.memory_space<vmem>>, vector<128x64xf32>
    %77 = arith.addf %75, %76 : vector<128x64xf32>
    %cst_34 = arith.constant dense<0xFF800000> : vector<128xf32>
    %78 = vector.multi_reduction <maximumf>, %77, %cst_34 [1] : vector<128x64xf32> to vector<128xf32>
    %79 = vector.shape_cast %78 : vector<128xf32> to vector<128x1xf32>
    %80 = vector.broadcast %79 : vector<128x1xf32> to vector<128x64xf32>
    %81 = arith.subf %77, %80 : vector<128x64xf32>
    %82 = math.exp %81 : vector<128x64xf32>
    %cst_35 = arith.constant dense<0.000000e+00> : vector<128xf32>
    %83 = vector.multi_reduction <add>, %82, %cst_35 [1] : vector<128x64xf32> to vector<128xf32>
    %84 = vector.shape_cast %83 : vector<128xf32> to vector<128x1xf32>
    %85 = vector.broadcast %84 : vector<128x1xf32> to vector<128x64xf32>
    %86 = arith.divf %82, %85 : vector<128x64xf32>
    %cst_36 = arith.constant dense<0.000000e+00> : vector<128x8xf32>
    %87 = tpu.matmul %86, %72, %cst_36 {dimension_numbers = #tpu.dot_dimension_numbers<[1], [0], [0], [1], [0, 0, 1, 1], [], []>} : vector<128x64xf32>, vector<64x8xf32>, vector<128x8xf32> -> vector<128x8xf32>
    %88 = vector.extract_strided_slice %87 {offsets = [0, 0], sizes = [32, 8], strides = [1, 1]} : vector<128x8xf32> to vector<32x8xf32>
    %89 = vector.extract_strided_slice %87 {offsets = [32, 0], sizes = [32, 8], strides = [1, 1]} : vector<128x8xf32> to vector<32x8xf32>
    %90 = vector.extract_strided_slice %87 {offsets = [64, 0], sizes = [32, 8], strides = [1, 1]} : vector<128x8xf32> to vector<32x8xf32>
    %91 = vector.extract_strided_slice %87 {offsets = [96, 0], sizes = [32, 8], strides = [1, 1]} : vector<128x8xf32> to vector<32x8xf32>
    %92 = tpu.concatenate %88, %89, %90, %91 in 1 : vector<32x8xf32>, vector<32x8xf32>, vector<32x8xf32>, vector<32x8xf32> -> vector<32x32xf32>
    %c0_37 = arith.constant 0 : index
    %c0_38 = arith.constant 0 : index
    %93 = vector.load %arg11[%c0_37, %c0_38] : memref<32x32xf32, #tpu.memory_space<vmem>>, vector<32x32xf32>
    %cst_39 = arith.constant dense<0.000000e+00> : vector<32x32xf32>
    %94 = tpu.matmul %92, %93, %cst_39 {dimension_numbers = #tpu.dot_dimension_numbers<[1], [0], [0], [1], [0, 0, 1, 1], [], []>} : vector<32x32xf32>, vector<32x32xf32>, vector<32x32xf32> -> vector<32x32xf32>
    %95 = arith.addf %94, %51 : vector<32x32xf32>
    %96 = vector.extract_strided_slice %95 {offsets = [0, 0], sizes = [16, 32], strides = [1, 1]} : vector<32x32xf32> to vector<16x32xf32>
    %97 = vector.extract_strided_slice %95 {offsets = [16, 0], sizes = [16, 32], strides = [1, 1]} : vector<32x32xf32> to vector<16x32xf32>
    %98 = tpu.concatenate %96, %97 in 1 : vector<16x32xf32>, vector<16x32xf32> -> vector<16x64xf32>
    %cst_40 = arith.constant 0.000000e+00 : f32
    %99 = vector.broadcast %cst_40 : f32 to vector<2x64xf32>
    %100 = tpu.concatenate %99, %98, %99 in 0 : vector<2x64xf32>, vector<16x64xf32>, vector<2x64xf32> -> vector<20x64xf32>
    %101 = vector.extract_strided_slice %100 {offsets = [0, 0], sizes = [16, 64], strides = [1, 1]} : vector<20x64xf32> to vector<16x64xf32>
    %102 = vector.extract_strided_slice %100 {offsets = [1, 0], sizes = [16, 64], strides = [1, 1]} : vector<20x64xf32> to vector<16x64xf32>
    %103 = vector.extract_strided_slice %100 {offsets = [2, 0], sizes = [16, 64], strides = [1, 1]} : vector<20x64xf32> to vector<16x64xf32>
    %104 = vector.extract_strided_slice %100 {offsets = [3, 0], sizes = [16, 64], strides = [1, 1]} : vector<20x64xf32> to vector<16x64xf32>
    %105 = vector.extract_strided_slice %100 {offsets = [4, 0], sizes = [16, 64], strides = [1, 1]} : vector<20x64xf32> to vector<16x64xf32>
    %106 = tpu.concatenate %101, %102, %103, %104, %105 in 1 : vector<16x64xf32>, vector<16x64xf32>, vector<16x64xf32>, vector<16x64xf32>, vector<16x64xf32> -> vector<16x320xf32>
    %c0_41 = arith.constant 0 : index
    %c0_42 = arith.constant 0 : index
    %107 = vector.load %arg13[%c0_41, %c0_42] : memref<320x64xf32, #tpu.memory_space<vmem>>, vector<320x64xf32>
    %cst_43 = arith.constant dense<0.000000e+00> : vector<16x64xf32>
    %108 = tpu.matmul %106, %107, %cst_43 {dimension_numbers = #tpu.dot_dimension_numbers<[1], [0], [0], [1], [0, 0, 1, 1], [], []>} : vector<16x320xf32>, vector<320x64xf32>, vector<16x64xf32> -> vector<16x64xf32>
    %c0_44 = arith.constant 0 : index
    %c0_45 = arith.constant 0 : index
    %109 = vector.load %arg14[%c0_44, %c0_45] : memref<1x64xf32, #tpu.memory_space<vmem>>, vector<1x64xf32>
    %110 = vector.broadcast %109 : vector<1x64xf32> to vector<16x64xf32>
    %111 = arith.addf %108, %110 : vector<16x64xf32>
    %cst_46 = arith.constant 0.000000e+00 : f32
    %112 = vector.broadcast %cst_46 : f32 to vector<16x64xf32>
    %113 = arith.maximumf %111, %112 : vector<16x64xf32>
    %114 = tpu.iota {dimensions = array<i32: 0>} : vector<8x16xi32>
    %115 = tpu.iota {dimensions = array<i32: 1>} : vector<8x16xi32>
    %c2_i32 = arith.constant 2 : i32
    %116 = vector.broadcast %c2_i32 : i32 to vector<8x16xi32>
    %117 = arith.muli %116, %114 : vector<8x16xi32>
    %118 = arith.cmpi eq, %115, %117 : vector<8x16xi32>
    %119 = arith.extui %118 : vector<8x16xi1> to vector<8x16xi32>
    %120 = arith.sitofp %119 : vector<8x16xi32> to vector<8x16xf32>
    %c2_i32_47 = arith.constant 2 : i32
    %121 = vector.broadcast %c2_i32_47 : i32 to vector<8x16xi32>
    %122 = arith.muli %121, %114 : vector<8x16xi32>
    %c1_i32 = arith.constant 1 : i32
    %123 = vector.broadcast %c1_i32 : i32 to vector<8x16xi32>
    %124 = arith.addi %122, %123 : vector<8x16xi32>
    %125 = arith.cmpi eq, %115, %124 : vector<8x16xi32>
    %126 = arith.extui %125 : vector<8x16xi1> to vector<8x16xi32>
    %127 = arith.sitofp %126 : vector<8x16xi32> to vector<8x16xf32>
    %cst_48 = arith.constant dense<0.000000e+00> : vector<8x64xf32>
    %128 = tpu.matmul %120, %113, %cst_48 {dimension_numbers = #tpu.dot_dimension_numbers<[1], [0], [0], [1], [0, 0, 1, 1], [], []>} : vector<8x16xf32>, vector<16x64xf32>, vector<8x64xf32> -> vector<8x64xf32>
    %cst_49 = arith.constant dense<0.000000e+00> : vector<8x64xf32>
    %129 = tpu.matmul %127, %113, %cst_49 {dimension_numbers = #tpu.dot_dimension_numbers<[1], [0], [0], [1], [0, 0, 1, 1], [], []>} : vector<8x16xf32>, vector<16x64xf32>, vector<8x64xf32> -> vector<8x64xf32>
    %130 = arith.maximumf %128, %129 : vector<8x64xf32>
    %cst_50 = arith.constant 0.000000e+00 : f32
    %131 = vector.broadcast %cst_50 : f32 to vector<2x64xf32>
    %132 = tpu.concatenate %131, %130, %131 in 0 : vector<2x64xf32>, vector<8x64xf32>, vector<2x64xf32> -> vector<12x64xf32>
    %133 = vector.extract_strided_slice %132 {offsets = [0, 0], sizes = [8, 64], strides = [1, 1]} : vector<12x64xf32> to vector<8x64xf32>
    %134 = vector.extract_strided_slice %132 {offsets = [1, 0], sizes = [8, 64], strides = [1, 1]} : vector<12x64xf32> to vector<8x64xf32>
    %135 = vector.extract_strided_slice %132 {offsets = [2, 0], sizes = [8, 64], strides = [1, 1]} : vector<12x64xf32> to vector<8x64xf32>
    %136 = vector.extract_strided_slice %132 {offsets = [3, 0], sizes = [8, 64], strides = [1, 1]} : vector<12x64xf32> to vector<8x64xf32>
    %137 = vector.extract_strided_slice %132 {offsets = [4, 0], sizes = [8, 64], strides = [1, 1]} : vector<12x64xf32> to vector<8x64xf32>
    %138 = tpu.concatenate %133, %134, %135, %136, %137 in 1 : vector<8x64xf32>, vector<8x64xf32>, vector<8x64xf32>, vector<8x64xf32>, vector<8x64xf32> -> vector<8x320xf32>
    %c0_51 = arith.constant 0 : index
    %c0_52 = arith.constant 0 : index
    %139 = vector.load %arg15[%c0_51, %c0_52] : memref<320x64xf32, #tpu.memory_space<vmem>>, vector<320x64xf32>
    %cst_53 = arith.constant dense<0.000000e+00> : vector<8x64xf32>
    %140 = tpu.matmul %138, %139, %cst_53 {dimension_numbers = #tpu.dot_dimension_numbers<[1], [0], [0], [1], [0, 0, 1, 1], [], []>} : vector<8x320xf32>, vector<320x64xf32>, vector<8x64xf32> -> vector<8x64xf32>
    %c0_54 = arith.constant 0 : index
    %c0_55 = arith.constant 0 : index
    %141 = vector.load %arg16[%c0_54, %c0_55] : memref<1x64xf32, #tpu.memory_space<vmem>>, vector<1x64xf32>
    %142 = vector.broadcast %141 : vector<1x64xf32> to vector<8x64xf32>
    %143 = arith.addf %140, %142 : vector<8x64xf32>
    %cst_56 = arith.constant 0.000000e+00 : f32
    %144 = vector.broadcast %cst_56 : f32 to vector<8x64xf32>
    %145 = arith.maximumf %143, %144 : vector<8x64xf32>
    %146 = tpu.iota {dimensions = array<i32: 0>} : vector<4x8xi32>
    %147 = tpu.iota {dimensions = array<i32: 1>} : vector<4x8xi32>
    %c2_i32_57 = arith.constant 2 : i32
    %148 = vector.broadcast %c2_i32_57 : i32 to vector<4x8xi32>
    %149 = arith.muli %148, %146 : vector<4x8xi32>
    %150 = arith.cmpi eq, %147, %149 : vector<4x8xi32>
    %151 = arith.extui %150 : vector<4x8xi1> to vector<4x8xi32>
    %152 = arith.sitofp %151 : vector<4x8xi32> to vector<4x8xf32>
    %c2_i32_58 = arith.constant 2 : i32
    %153 = vector.broadcast %c2_i32_58 : i32 to vector<4x8xi32>
    %154 = arith.muli %153, %146 : vector<4x8xi32>
    %c1_i32_59 = arith.constant 1 : i32
    %155 = vector.broadcast %c1_i32_59 : i32 to vector<4x8xi32>
    %156 = arith.addi %154, %155 : vector<4x8xi32>
    %157 = arith.cmpi eq, %147, %156 : vector<4x8xi32>
    %158 = arith.extui %157 : vector<4x8xi1> to vector<4x8xi32>
    %159 = arith.sitofp %158 : vector<4x8xi32> to vector<4x8xf32>
    %cst_60 = arith.constant dense<0.000000e+00> : vector<4x64xf32>
    %160 = tpu.matmul %152, %145, %cst_60 {dimension_numbers = #tpu.dot_dimension_numbers<[1], [0], [0], [1], [0, 0, 1, 1], [], []>} : vector<4x8xf32>, vector<8x64xf32>, vector<4x64xf32> -> vector<4x64xf32>
    %cst_61 = arith.constant dense<0.000000e+00> : vector<4x64xf32>
    %161 = tpu.matmul %159, %145, %cst_61 {dimension_numbers = #tpu.dot_dimension_numbers<[1], [0], [0], [1], [0, 0, 1, 1], [], []>} : vector<4x8xf32>, vector<8x64xf32>, vector<4x64xf32> -> vector<4x64xf32>
    %162 = arith.maximumf %160, %161 : vector<4x64xf32>
    %163 = vector.extract_strided_slice %162 {offsets = [0, 0], sizes = [1, 32], strides = [1, 1]} : vector<4x64xf32> to vector<1x32xf32>
    %164 = vector.extract_strided_slice %162 {offsets = [1, 0], sizes = [1, 32], strides = [1, 1]} : vector<4x64xf32> to vector<1x32xf32>
    %165 = vector.extract_strided_slice %162 {offsets = [2, 0], sizes = [1, 32], strides = [1, 1]} : vector<4x64xf32> to vector<1x32xf32>
    %166 = vector.extract_strided_slice %162 {offsets = [3, 0], sizes = [1, 32], strides = [1, 1]} : vector<4x64xf32> to vector<1x32xf32>
    %167 = tpu.concatenate %163, %164, %165, %166 in 1 : vector<1x32xf32>, vector<1x32xf32>, vector<1x32xf32>, vector<1x32xf32> -> vector<1x128xf32>
    %168 = vector.extract_strided_slice %162 {offsets = [0, 32], sizes = [1, 32], strides = [1, 1]} : vector<4x64xf32> to vector<1x32xf32>
    %169 = vector.extract_strided_slice %162 {offsets = [1, 32], sizes = [1, 32], strides = [1, 1]} : vector<4x64xf32> to vector<1x32xf32>
    %170 = vector.extract_strided_slice %162 {offsets = [2, 32], sizes = [1, 32], strides = [1, 1]} : vector<4x64xf32> to vector<1x32xf32>
    %171 = vector.extract_strided_slice %162 {offsets = [3, 32], sizes = [1, 32], strides = [1, 1]} : vector<4x64xf32> to vector<1x32xf32>
    %172 = tpu.concatenate %168, %169, %170, %171 in 1 : vector<1x32xf32>, vector<1x32xf32>, vector<1x32xf32>, vector<1x32xf32> -> vector<1x128xf32>
    %173 = tpu.concatenate %167, %172 in 0 : vector<1x128xf32>, vector<1x128xf32> -> vector<2x128xf32>
    %c0_62 = arith.constant 0 : index
    %c0_63 = arith.constant 0 : index
    %174 = vector.load %arg17[%c0_62, %c0_63] : memref<128x128xf32, #tpu.memory_space<vmem>>, vector<128x128xf32>
    %cst_64 = arith.constant dense<0.000000e+00> : vector<2x128xf32>
    %175 = tpu.matmul %173, %174, %cst_64 {dimension_numbers = #tpu.dot_dimension_numbers<[1], [0], [0], [1], [0, 0, 1, 1], [], []>} : vector<2x128xf32>, vector<128x128xf32>, vector<2x128xf32> -> vector<2x128xf32>
    %c0_65 = arith.constant 0 : index
    %c0_66 = arith.constant 0 : index
    %176 = vector.load %arg18[%c0_65, %c0_66] : memref<1x128xf32, #tpu.memory_space<vmem>>, vector<1x128xf32>
    %177 = vector.broadcast %176 : vector<1x128xf32> to vector<2x128xf32>
    %178 = arith.addf %175, %177 : vector<2x128xf32>
    %cst_67 = arith.constant 0.000000e+00 : f32
    %179 = vector.broadcast %cst_67 : f32 to vector<2x128xf32>
    %180 = arith.maximumf %178, %179 : vector<2x128xf32>
    %c0_68 = arith.constant 0 : index
    %c0_69 = arith.constant 0 : index
    %181 = vector.load %arg19[%c0_68, %c0_69] : memref<128x32xf32, #tpu.memory_space<vmem>>, vector<128x32xf32>
    %cst_70 = arith.constant dense<0.000000e+00> : vector<2x32xf32>
    %182 = tpu.matmul %180, %181, %cst_70 {dimension_numbers = #tpu.dot_dimension_numbers<[1], [0], [0], [1], [0, 0, 1, 1], [], []>} : vector<2x128xf32>, vector<128x32xf32>, vector<2x32xf32> -> vector<2x32xf32>
    %c0_71 = arith.constant 0 : index
    %c0_72 = arith.constant 0 : index
    %183 = vector.load %arg20[%c0_71, %c0_72] : memref<1x32xf32, #tpu.memory_space<vmem>>, vector<1x32xf32>
    %184 = vector.broadcast %183 : vector<1x32xf32> to vector<2x32xf32>
    %185 = arith.addf %182, %184 : vector<2x32xf32>
    %cst_73 = arith.constant 0.000000e+00 : f32
    %186 = vector.broadcast %cst_73 : f32 to vector<2x32xf32>
    %187 = arith.maximumf %185, %186 : vector<2x32xf32>
    %c0_74 = arith.constant 0 : index
    %c0_75 = arith.constant 0 : index
    %188 = vector.load %arg21[%c0_74, %c0_75] : memref<32x128xf32, #tpu.memory_space<vmem>>, vector<32x128xf32>
    %cst_76 = arith.constant dense<0.000000e+00> : vector<2x128xf32>
    %189 = tpu.matmul %187, %188, %cst_76 {dimension_numbers = #tpu.dot_dimension_numbers<[1], [0], [0], [1], [0, 0, 1, 1], [], []>} : vector<2x32xf32>, vector<32x128xf32>, vector<2x128xf32> -> vector<2x128xf32>
    %c0_77 = arith.constant 0 : index
    %c0_78 = arith.constant 0 : index
    %190 = vector.load %arg22[%c0_77, %c0_78] : memref<1x128xf32, #tpu.memory_space<vmem>>, vector<1x128xf32>
    %191 = vector.broadcast %190 : vector<1x128xf32> to vector<2x128xf32>
    %192 = arith.addf %189, %191 : vector<2x128xf32>
    %c0_79 = arith.constant 0 : index
    %c0_80 = arith.constant 0 : index
    %193 = vector.load %arg23[%c0_79, %c0_80] : memref<2x128xf32, #tpu.memory_space<vmem>>, vector<2x128xf32>
    tpu.vector_store %arg23[%c0_79, %c0_80], %192 {strides = array<i32>} : memref<2x128xf32, #tpu.memory_space<vmem>>, vector<2x128xf32>,
    return
  }
  func.func @transform_0(%arg0: i32) -> (i32, i32) {
    %c0_i32 = arith.constant 0 : i32
    %c0_i32_0 = arith.constant 0 : i32
    %c0_i32_1 = arith.constant 0 : i32
    return %c0_i32, %c0_i32_0 : i32, i32
  }
  func.func @transform_1(%arg0: i32) -> (i32, i32) {
    %c0_i32 = arith.constant 0 : i32
    %c0_i32_0 = arith.constant 0 : i32
    %c0_i32_1 = arith.constant 0 : i32
    return %c0_i32, %c0_i32_0 : i32, i32
  }
  func.func @transform_2(%arg0: i32) -> (i32, i32) {
    %c0_i32 = arith.constant 0 : i32
    %c0_i32_0 = arith.constant 0 : i32
    %c0_i32_1 = arith.constant 0 : i32
    return %c0_i32, %c0_i32_0 : i32, i32
  }
  func.func @transform_3(%arg0: i32) -> (i32, i32) {
    %c0_i32 = arith.constant 0 : i32
    %c0_i32_0 = arith.constant 0 : i32
    %c0_i32_1 = arith.constant 0 : i32
    return %c0_i32, %c0_i32_0 : i32, i32
  }
  func.func @transform_4(%arg0: i32) -> (i32, i32) {
    %c0_i32 = arith.constant 0 : i32
    %c0_i32_0 = arith.constant 0 : i32
    %c0_i32_1 = arith.constant 0 : i32
    return %c0_i32, %c0_i32_0 : i32, i32
  }
  func.func @transform_5(%arg0: i32) -> (i32, i32) {
    %c0_i32 = arith.constant 0 : i32
    %c0_i32_0 = arith.constant 0 : i32
    %c0_i32_1 = arith.constant 0 : i32
    return %c0_i32, %c0_i32_0 : i32, i32
  }
  func.func @transform_6(%arg0: i32) -> (i32, i32) {
    %c0_i32 = arith.constant 0 : i32
    %c0_i32_0 = arith.constant 0 : i32
    %c0_i32_1 = arith.constant 0 : i32
    return %c0_i32, %c0_i32_0 : i32, i32
  }
  func.func @transform_7(%arg0: i32) -> (i32, i32) {
    %c0_i32 = arith.constant 0 : i32
    %c0_i32_0 = arith.constant 0 : i32
    %c0_i32_1 = arith.constant 0 : i32
    return %c0_i32, %c0_i32_0 : i32, i32
  }
  func.func @transform_8(%arg0: i32) -> (i32, i32) {
    %c0_i32 = arith.constant 0 : i32
    %c0_i32_0 = arith.constant 0 : i32
    %c0_i32_1 = arith.constant 0 : i32
    return %c0_i32, %c0_i32_0 : i32, i32
  }
  func.func @transform_9(%arg0: i32) -> (i32, i32) {
    %c0_i32 = arith.constant 0 : i32
    %c0_i32_0 = arith.constant 0 : i32
    %c0_i32_1 = arith.constant 0 : i32
    return %c0_i32, %c0_i32_0 : i32, i32
  }
  func.func @transform_10(%arg0: i32) -> (i32, i32) {
    %c0_i32 = arith.constant 0 : i32
    %c0_i32_0 = arith.constant 0 : i32
    %c0_i32_1 = arith.constant 0 : i32
    return %c0_i32, %c0_i32_0 : i32, i32
  }
  func.func @transform_11(%arg0: i32) -> (i32, i32) {
    %c0_i32 = arith.constant 0 : i32
    %c0_i32_0 = arith.constant 0 : i32
    %c0_i32_1 = arith.constant 0 : i32
    return %c0_i32, %c0_i32_0 : i32, i32
  }
  func.func @transform_12(%arg0: i32) -> (i32, i32) {
    %c0_i32 = arith.constant 0 : i32
    %c0_i32_0 = arith.constant 0 : i32
    %c0_i32_1 = arith.constant 0 : i32
    return %c0_i32, %c0_i32_0 : i32, i32
  }
  func.func @transform_13(%arg0: i32) -> (i32, i32) {
    %c0_i32 = arith.constant 0 : i32
    %c0_i32_0 = arith.constant 0 : i32
    %c0_i32_1 = arith.constant 0 : i32
    return %c0_i32, %c0_i32_0 : i32, i32
  }
  func.func @transform_14(%arg0: i32) -> (i32, i32) {
    %c0_i32 = arith.constant 0 : i32
    %c0_i32_0 = arith.constant 0 : i32
    %c0_i32_1 = arith.constant 0 : i32
    return %c0_i32, %c0_i32_0 : i32, i32
  }
  func.func @transform_15(%arg0: i32) -> (i32, i32) {
    %c0_i32 = arith.constant 0 : i32
    %c0_i32_0 = arith.constant 0 : i32
    %c0_i32_1 = arith.constant 0 : i32
    return %c0_i32, %c0_i32_0 : i32, i32
  }
  func.func @transform_16(%arg0: i32) -> (i32, i32) {
    %c0_i32 = arith.constant 0 : i32
    %c0_i32_0 = arith.constant 0 : i32
    %c0_i32_1 = arith.constant 0 : i32
    return %c0_i32, %c0_i32_0 : i32, i32
  }
  func.func @transform_17(%arg0: i32) -> (i32, i32) {
    %c0_i32 = arith.constant 0 : i32
    %c0_i32_0 = arith.constant 0 : i32
    %c0_i32_1 = arith.constant 0 : i32
    return %c0_i32, %c0_i32_0 : i32, i32
  }
  func.func @transform_18(%arg0: i32) -> (i32, i32) {
    %c0_i32 = arith.constant 0 : i32
    %c0_i32_0 = arith.constant 0 : i32
    %c0_i32_1 = arith.constant 0 : i32
    return %c0_i32, %c0_i32_0 : i32, i32
  }
  func.func @transform_19(%arg0: i32) -> (i32, i32) {
    %c0_i32 = arith.constant 0 : i32
    %c0_i32_0 = arith.constant 0 : i32
    %c0_i32_1 = arith.constant 0 : i32
    return %c0_i32, %c0_i32_0 : i32, i32
  }
  func.func @transform_20(%arg0: i32) -> (i32, i32) {
    %c0_i32 = arith.constant 0 : i32
    %c0_i32_0 = arith.constant 0 : i32
    %c0_i32_1 = arith.constant 0 : i32
    return %c0_i32, %c0_i32_0 : i32, i32
  }
  func.func @transform_21(%arg0: i32) -> (i32, i32) {
    %c0_i32 = arith.constant 0 : i32
    %c0_i32_0 = arith.constant 0 : i32
    %c0_i32_1 = arith.constant 0 : i32
    return %c0_i32, %c0_i32_0 : i32, i32
  }
  func.func @transform_22(%arg0: i32) -> (i32, i32) {
    %c0_i32 = arith.constant 0 : i32
    %c0_i32_0 = arith.constant 0 : i32
    %c0_i32_1 = arith.constant 0 : i32
    return %c0_i32, %c0_i32_0 : i32, i32
  }
}

</mosaic_0001>

<bundles_post_ra>
// kernel: ican_forward.1
= control target key start
LH: loop header
LB: loop body
LE: loop exit
PB: predicated region body
PF: predicated region fallthrough
CT: control target
= control target key end

     0   :  { %s3264_s0 = inlined_call_operand.vmem [shape: f32[16,32], index: 0, kind: input, shape index: {}]   ;;  %s3265_s1 = inlined_call_operand.vmem [shape: f32[32,32], index: 1, kind: input, shape index: {}]   ;;  %s3266_s2 = inlined_call_operand.vmem [shape: f32[8,32], index: 2, kind: input, shape index: {}]   ;;  %s3267_s3 = inlined_call_operand.vmem [shape: f32[16,32], index: 3, kind: input, shape index: {}]   ;;  %s3268_s4 = inlined_call_operand.vmem [shape: f32[1,32], index: 4, kind: input, shape index: {}]   ;;  %s3269_s5 = inlined_call_operand.vmem [shape: f32[1,32], index: 5, kind: input, shape index: {}]   ;;  %s3270_s6 = inlined_call_operand.vmem [shape: f32[1,32], index: 6, kind: input, shape index: {}]   ;;  %s3271_s7 = inlined_call_operand.vmem [shape: f32[1,32], index: 7, kind: input, shape index: {}]   ;;  %s3272_s8 = inlined_call_operand.vmem [shape: f32[32,32], index: 8, kind: input, shape index: {}]   ;;  %s3273_s9 = inlined_call_operand.vmem [shape: f32[32,64], index: 9, kind: input, shape index: {}]   ;;  %s3274_s10 = inlined_call_operand.vmem [shape: f32[32,32], index: 10, kind: input, shape index: {}]   ;;  %s3275_s11 = inlined_call_operand.vmem [shape: f32[128,64], index: 11, kind: input, shape index: {}]   ;;  %s3276_s12 = inlined_call_operand.vmem [shape: f32[320,64], index: 12, kind: input, shape index: {}]   ;;  %s3277_s13 = inlined_call_operand.vmem [shape: f32[1,64], index: 13, kind: input, shape index: {}]   ;;  %s3278_s14 = inlined_call_operand.vmem [shape: f32[320,64], index: 14, kind: input, shape index: {}]   ;;  %s3279_s15 = inlined_call_operand.vmem [shape: f32[1,64], index: 15, kind: input, shape index: {}]   ;;  %s3280_s16 = inlined_call_operand.vmem [shape: f32[128,128], index: 16, kind: input, shape index: {}]   ;;  %s3281_s17 = inlined_call_operand.vmem [shape: f32[1,128], index: 17, kind: input, shape index: {}]   ;;  %s3282_s18 = inlined_call_operand.vmem [shape: f32[128,32], index: 18, kind: input, shape index: {}]   ;;  %s3283_s19 = inlined_call_operand.vmem [shape: f32[1,32], index: 19, kind: input, shape index: {}]   ;;  %s3284_s20 = inlined_call_operand.vmem [shape: f32[32,128], index: 20, kind: input, shape index: {}]   ;;  %s3285_s21 = inlined_call_operand.vmem [shape: f32[1,128], index: 21, kind: input, shape index: {}]   ;;  %s3286_s22 = inlined_call_operand.hbm [shape: f32[2,128], index: 22, kind: output, shape index: {}]  }
   0x1   :  { %3290 = sst [smem:[#allocation5_spill]] %s3264_s0 }
   0x2   :  { %3291 = sst [smem:[#allocation6_spill]] %s3265_s1 }
   0x3   :  { %3292 = sst [smem:[#allocation7_spill]] %s3266_s2 }
   0x4   :  { %3293 = sst [smem:[#allocation8_spill]] %s3267_s3 }
   0x5   :  { %3294 = sst [smem:[#allocation9_spill]] %s3268_s4 }
   0x6   :  { %3295 = sst [smem:[#allocation10_spill]] %s3269_s5 }
   0x7   :  { %3296 = sst [smem:[#allocation11_spill]] %s3270_s6 }
   0x8   :  { %s3297_s29 = sld [smem:[#allocation8_spill]]  ;;  %vm81_vm0 = vcmask 261120  }
   0x9   :  { %s3298_s0 = sld [smem:[#allocation6_spill]] }
   0xa   :  { %s3299_s5 = sld [smem:[#allocation7_spill]] }
   0xb   :  { %s3300_s25 = sld [smem:[#allocation5_spill]] }
   0xe   :  { %v73_v0 = vld [vmem:[%s3297_s29] sm:$0xff]  ;;  %v74_v6 = vld [vmem:[%s3297_s29 + $0x8] sm:$0xff] }
   0xf   :  { %v175_v1 = vld [vmem:[%s3298_s0] sm:$0xff]  ;;  %v176_v7 = vld [vmem:[%s3298_s0 + $0x8] sm:$0xff] }
  0x10   :  { %v72_v2 = vld [vmem:[%s3299_s5] sm:$0xff]  ;;  %v179_v3 = vadd.f32 %v175_v1, %v73_v0  ;;  %v180_v11 = vadd.f32 %v176_v7, %v74_v6 }
  0x11   :  { %v75_v4 = vld [vmem:[%s3300_s25] sm:$0xff]  ;;  %v76_v9 = vld [vmem:[%s3300_s25 + $0x8] sm:$0xff] }
  0x12   :  { %v77_v5 = vadd.f32 %v75_v4, %v72_v2  ;;  %v185_v8 = vsel %vm81_vm0, %v179_v3, 0.0  ;;  %v78_v12 = vadd.f32 %v76_v9, %v72_v2 }
  0x13   :  { %186 = vadd.xlane.f32.xlu2 %v185_v8 }
  0x14   :  { %v82_v10 = vsel %vm81_vm0, %v77_v5, 0.0 }
  0x15   :  { %83 = vadd.xlane.f32.xlu0 %v82_v10 }
  0x16   :  { %27 = vsyncpa [#allocation3], 0  ;;  %v188_v13 = vsel %vm81_vm0, %v180_v11, 0.0  ;;  %v85_v14 = vsel %vm81_vm0, %v78_v12, 0.0  ;;  %v177_v15 = vld [vmem:[%s3298_s0 + $0x10] sm:$0xff]  ;;  %v2077_v18 = vmov 32.0  }
  0x17   :  { %v181_v16 = vadd.f32 %v177_v15, %v73_v0  ;;  %1961 = vrcp.f32 %v2077_v18  ;;  %v178_v44 = vld [vmem:[%s3298_s0 + $0x18] sm:$0xff]  ;;  %v398_v4 = vld [vmem:[%s3273_s9 + $0x10] sm:$0xff]  ;;  %v352_v8 = vld [vmem:[%s3272_s8 + $0x8] sm:$0xff]  ;;  %s3307_s5 = sld [smem:[#allocation11_spill]]  ;;  %s2078_s28 = smov 104  }
  0x18   :  { %v182_v47 = vadd.f32 %v178_v44, %v74_v6  ;;  %v354_v63 = vld [vmem:[%s3272_s8 + $0x18] sm:$0xff]  ;;  %v397_v9 = vld [vmem:[%s3273_s9 + $0x8] sm:$0xff]  ;;  %s3308_s2 = sld [smem:[#allocation9_spill]]  ;;  %s2079_s30 = smov 120  }
  0x19   :  { %v191_v17 = vsel %vm81_vm0, %v181_v16, 0.0  ;;  %v399_v0 = vld [vmem:[%s3273_s9 + $0x18] sm:$0xff]  ;;  %379 = vmatpush.msra.mxu0 %v354_v63  ;;  %s3309_s3 = sld [smem:[#allocation10_spill]]  ;;  %s2080_s29 = smov 112  }
  0x1a   :  { %v194_v49 = vsel %vm81_vm0, %v182_v47, 0.0  ;;  %418 = vmatpush.msra.mxu1 %v399_v0  ;;  %s2086_s1 = smov 64  }
  0x1b   :  { %189 = vadd.xlane.f32.xlu2 %v188_v13  ;;  %v396_v13 = vld [vmem:[%s3273_s9] sm:$0xff] }
  0x1c   :  { %419 = vmatpush.msra.mxu1 %v398_v4 }
  0x1d   :  { %86 = vadd.xlane.f32.xlu0 %v85_v14  ;;  %v1962_v19 = vpop.eup %1961 }
  0x1e   :  { %v89_v20 = vmul.f32 32.0, %v1962_v19  ;;  %vm93_vm1 = vweird.f32 %v1962_v19  ;;  %420 = vmatpush.msra.mxu1 %v397_v9 }
  0x20   :  { %v90_v21 = vsub.f32 1.0, %v89_v20  ;;  %421 = vmatpush.msra.mxu1 %v396_v13 }
  0x22   :  { %v91_v22 = vmul.f32 %v1962_v19, %v90_v21 }
  0x24   :  { %v92_v23 = vadd.f32 %v1962_v19, %v91_v22 }
  0x25   :  { %192 = vadd.xlane.f32.xlu0 %v191_v17 }
  0x26   :  { %v2233_v24 = vsel %vm93_vm1, %v1962_v19, %v92_v23 }
  0x86   :  { %v187_v25 = vpop.xlane.xlu2 %186 }
  0x87   :  { %v197_v26 = vmul.f32 %v187_v25, %v2233_v24 }
  0x88   :  { %v84_v27 = vpop.xlane.xlu0 %83 }
  0x89   :  { %v95_v28 = vmul.f32 %v2233_v24, %v84_v27  ;;  %v2237_v29 = vsub.f32 %v179_v3, %v197_v26  ;;  %v353_v3 = vld [vmem:[%s3272_s8 + $0x10] sm:$0xff] }
  0x8a   :  { %380 = vmatpush.msra.mxu0 %v353_v3 }
  0x8b   :  { %v2239_v30 = vsub.f32 %v77_v5, %v95_v28  ;;  %v205_v31 = vmul.f32 %v2237_v29, %v2237_v29 }
  0x8c   :  { %381 = vmatpush.msra.mxu0 %v352_v8 }
  0x8d   :  { %v99_v32 = vmul.f32 %v2239_v30, %v2239_v30  ;;  %v209_v33 = vsel %vm81_vm0, %v205_v31, 0.0 }
  0x8e   :  { %210 = vadd.xlane.f32.xlu2 %v209_v33  ;;  %v190_v34 = vpop.xlane.xlu2 %189 }
  0x8f   :  { %v101_v35 = vsel %vm81_vm0, %v99_v32, 0.0  ;;  %v198_v36 = vmul.f32 %v190_v34, %v2233_v24 }
  0x90   :  { %102 = vadd.xlane.f32.xlu1 %v101_v35  ;;  %v87_v37 = vpop.xlane.xlu0 %86 }
  0x91   :  { %v96_v38 = vmul.f32 %v2233_v24, %v87_v37  ;;  %v2249_v39 = vsub.f32 %v180_v11, %v198_v36 }
  0x93   :  { %v2251_v40 = vsub.f32 %v78_v12, %v96_v38  ;;  %v206_v41 = vmul.f32 %v2249_v39, %v2249_v39  ;;  %v351_v12 = vld [vmem:[%s3272_s8] sm:$0xff] }
  0x94   :  { %382 = vmatpush.msra.mxu0 %v351_v12 }
  0x95   :  { %v100_v42 = vmul.f32 %v2251_v40, %v2251_v40  ;;  %v212_v43 = vsel %vm81_vm0, %v206_v41, 0.0 }
  0x96   :  { %213 = vadd.xlane.f32.xlu0 %v212_v43 }
  0x97   :  { %v104_v45 = vsel %vm81_vm0, %v100_v42, 0.0 }
  0x98   :  { %105 = vadd.xlane.f32.xlu1 %v104_v45  ;;  %v193_v46 = vpop.xlane.xlu0 %192 }
  0x99   :  { %v199_v48 = vmul.f32 %v193_v46, %v2233_v24 }
  0x9b   :  { %v2264_v50 = vsub.f32 %v181_v16, %v199_v48 }
  0x9d   :  { %v207_v51 = vmul.f32 %v2264_v50, %v2264_v50 }
  0x9f   :  { %v215_v52 = vsel %vm81_vm0, %v207_v51, 0.0 }
  0xa0   :  { %195 = vadd.xlane.f32.xlu1 %v194_v49 }
  0xa8   :  { %216 = vadd.xlane.f32.xlu1 %v215_v52 }
 0x101   :  { %v211_v53 = vpop.xlane.xlu2 %210 }
 0x102   :  { %v221_v54 = vmul.f32 %v211_v53, %v2233_v24 }
 0x103   :  { %v103_v55 = vpop.xlane.xlu1 %102 }
 0x104   :  { %v107_v56 = vmul.f32 %v103_v55, %v2233_v24  ;;  %v2271_v57 = vadd.f32 1e-12, %v221_v54 }
 0x106   :  { %v2273_v58 = vadd.f32 1e-12, %v107_v56  ;;  %1963 = vrsqrt.f32 %v2271_v57  ;;  %vm236_vm2 = vcmp.eq.f32.partialorder %v2271_v57, inf  ;;  %v239_v28 = vand.u32 2147483648, %v2271_v57 }
 0x107   :  { %vm238_vm3 = vcmp.eq.f32.partialorder %v2271_v57, 0.0 }
 0x108   :  { %1965 = vrsqrt.f32 %v2273_v58  ;;  %vm118_vm4 = vcmp.eq.f32.partialorder %v2273_v58, inf  ;;  %v121_v46 = vand.u32 2147483648, %v2273_v58  ;;  %vm120_vm5 = vcmp.eq.f32.partialorder %v2273_v58, 0.0 }
 0x109   :  { %v214_v59 = vpop.xlane.xlu0 %213 }
 0x10a   :  { %v222_v61 = vmul.f32 %v214_v59, %v2233_v24 }
 0x10b   :  { %v106_v60 = vpop.xlane.xlu1 %105 }
 0x10c   :  { %v108_v62 = vmul.f32 %v106_v60, %v2233_v24  ;;  %v1964_v1 = vpop.eup %1963  ;;  %v2285_v2 = vadd.f32 1e-12, %v222_v61 }
 0x10d   :  { %v230_v6 = vmul.f32 %v1964_v1, %v2271_v57 }
 0x10e   :  { %v1966_v5 = vpop.eup %1965  ;;  %v2294_v7 = vadd.f32 1e-12, %v108_v62  ;;  %1967 = vrsqrt.f32 %v2285_v2  ;;  %vm248_vm6 = vcmp.eq.f32.partialorder %v2285_v2, inf  ;;  %v251_v54 = vand.u32 2147483648, %v2285_v2 }
 0x10f   :  { %v112_v10 = vmul.f32 %v1966_v5, %v2273_v58  ;;  %v231_v11 = vmul.f32 %v1964_v1, %v230_v6  ;;  %vm250_vm7 = vcmp.eq.f32.partialorder %v2285_v2, 0.0 }
 0x110   :  { %1969 = vrsqrt.f32 %v2294_v7  ;;  %vm130_vm8 = vcmp.eq.f32.partialorder %v2294_v7, inf  ;;  %vm132_vm9 = vcmp.eq.f32.partialorder %v2294_v7, 0.0  ;;  %v133_v61 = vand.u32 2147483648, %v2294_v7 }
 0x111   :  { %v113_v14 = vmul.f32 %v1966_v5, %v112_v10  ;;  %v232_v15 = vmul.f32 0.5, %v231_v11 }
 0x113   :  { %v114_v16 = vmul.f32 0.5, %v113_v14  ;;  %v196_v17 = vpop.xlane.xlu1 %195  ;;  %v233_v18 = vsub.f32 1.5, %v232_v15 }
 0x114   :  { %v200_v19 = vmul.f32 %v196_v17, %v2233_v24  ;;  %v1968_v20 = vpop.eup %1967 }
 0x115   :  { %v115_v21 = vsub.f32 1.5, %v114_v16  ;;  %v242_v23 = vmul.f32 %v1968_v20, %v2285_v2  ;;  %v234_v26 = vmul.f32 %v1964_v1, %v233_v18 }
 0x116   :  { %v1970_v22 = vpop.eup %1969  ;;  %v2313_v25 = vsub.f32 %v182_v47, %v200_v19 }
 0x117   :  { %v124_v27 = vmul.f32 %v1970_v22, %v2294_v7  ;;  %v116_v31 = vmul.f32 %v1966_v5, %v115_v21  ;;  %v243_v32 = vmul.f32 %v1968_v20, %v242_v23  ;;  %v235_v34 = vmul.f32 %v234_v26, %v2271_v57  ;;  %v2368_v23 = vld [vmem:[%s3307_s5] ss:$0 sm:$0xff] }
 0x118   :  { %v208_v33 = vmul.f32 %v2313_v25, %v2313_v25 }
 0x119   :  { %v125_v35 = vmul.f32 %v1970_v22, %v124_v27  ;;  %v117_v36 = vmul.f32 %v116_v31, %v2273_v58  ;;  %v244_v37 = vmul.f32 0.5, %v243_v32  ;;  %v237_v41 = vsel %vm236_vm2, %v2271_v57, %v235_v34 }
 0x11a   :  { %v218_v38 = vsel %vm81_vm0, %v208_v33, 0.0  ;;  %v240_v44 = vsel %vm238_vm3, %v239_v28, %v237_v41 }
 0x11b   :  { %v126_v42 = vmul.f32 0.5, %v125_v35  ;;  %219 = vadd.xlane.f32.xlu2 %v218_v38  ;;  %v217_v43 = vpop.xlane.xlu1 %216  ;;  %v119_v45 = vsel %vm118_vm4, %v2273_v58, %v117_v36  ;;  %v245_v47 = vsub.f32 1.5, %v244_v37  ;;  %1971 = vrcp.f32 %v240_v44  ;;  %v2377_v36 = vld [vmem:[%s3271_s7] ss:$0 sm:$0xff] }
 0x11c   :  { %v223_v48 = vmul.f32 %v217_v43, %v2233_v24  ;;  %v122_v51 = vsel %vm120_vm5, %v121_v46, %v119_v45  ;;  %vm282_vm10 = vweird.f32 %v240_v44  ;;  %v286_v63 = vand.u32 2147483647, %v240_v44  ;;  %v1954_v38 = vld [vmem:[%s3308_s2] ss:$0 sm:$0xff]  ;;  %s2088_s2 = smov [#allocation2]  }
 0x11d   :  { %v127_v49 = vsub.f32 1.5, %v126_v42  ;;  %1973 = vrcp.f32 %v122_v51  ;;  %v246_v53 = vmul.f32 %v1968_v20, %v245_v47  ;;  %v288_v0 = vand.u32 2147483648, %v240_v44  ;;  %v1955_v45 = vld [vmem:[%s3309_s3] ss:$0 sm:$0xff]  ;;  %s2081_s3 = smov 96  }
 0x11e   :  { %v2330_v52 = vadd.f32 1e-12, %v223_v48  ;;  %v144_v8 = vand.u32 2147483647, %v122_v51  ;;  %v146_v9 = vand.u32 2147483648, %v122_v51  ;;  %vm2354_vm13 = vcmp.eq.f32.partialorder %v286_v63, 8.507059e+37 }
 0x11f   :  { %v128_v55 = vmul.f32 %v1970_v22, %v127_v49  ;;  %v247_v56 = vmul.f32 %v246_v53, %v2285_v2  ;;  %v289_v15 = vor.u32 1.1754944e-38, %v288_v0  ;;  %vm140_vm15 = vweird.f32 %v122_v51 }
 0x120   :  { %1975 = vrsqrt.f32 %v2330_v52  ;;  %vm2358_vm1 = vcmp.eq.f32.partialorder %v144_v8, 8.507059e+37  ;;  %v147_v19 = vor.u32 1.1754944e-38, %v146_v9  ;;  %vm260_vm2 = vcmp.eq.f32.partialorder %v2330_v52, inf }
 0x121   :  { %v1972_v57 = vpop.eup %1971  ;;  %v129_v58 = vmul.f32 %v128_v55, %v2294_v7  ;;  %v249_v60 = vsel %vm248_vm6, %v2285_v2, %v247_v56  ;;  %vm262_vm3 = vcmp.eq.f32.partialorder %v2330_v52, 0.0  ;;  %v263_v47 = vand.u32 2147483648, %v2330_v52 }
 0x122   :  { %v278_v59 = vmul.f32 %v1972_v57, %v240_v44  ;;  %v252_v1 = vsel %vm250_vm7, %v251_v54, %v249_v60  ;;  %vm283_vm11 = vweird.f32 %v1972_v57 }
 0x123   :  { %v1974_v62 = vpop.eup %1973  ;;  %v131_v3 = vsel %vm130_vm8, %v2294_v7, %v129_v58  ;;  %1977 = vrcp.f32 %v252_v1  ;;  %vm2350_vm12 = vmor %vm282_vm10, %vm283_vm11  ;;  %v301_v31 = vand.u32 2147483647, %v252_v1  ;;  %v303_v32 = vand.u32 2147483648, %v252_v1 }
 0x124   :  { %v279_v4 = vsub.f32 1.0, %v278_v59  ;;  %v136_v5 = vmul.f32 %v1974_v62, %v122_v51  ;;  %v2345_v10 = vsel %vm132_vm9, %v133_v61, %v131_v3  ;;  %vm141_vm14 = vweird.f32 %v1974_v62 }
 0x125   :  { %1979 = vrcp.f32 %v2345_v10  ;;  %vm142_vm4 = vmor %vm140_vm15, %vm141_vm14  ;;  %vm297_vm5 = vweird.f32 %v252_v1  ;;  %vm2391_vm7 = vcmp.eq.f32.partialorder %v301_v31, 8.507059e+37  ;;  %v304_v51 = vor.u32 1.1754944e-38, %v303_v32 }
 0x126   :  { %v1976_v6 = vpop.eup %1975  ;;  %v280_v11 = vmul.f32 %v1972_v57, %v279_v4  ;;  %v137_v12 = vsub.f32 1.0, %v136_v5  ;;  %v161_v56 = vand.u32 2147483648, %v2345_v10  ;;  %v159_v60 = vand.u32 2147483647, %v2345_v10 }
 0x127   :  { %v254_v2 = vmul.f32 %v1976_v6, %v2330_v52  ;;  %vm155_vm10 = vweird.f32 %v2345_v10 }
 0x128   :  { %v281_v7 = vadd.f32 %v1972_v57, %v280_v11  ;;  %v138_v17 = vmul.f32 %v1974_v62, %v137_v12  ;;  %v162_v4 = vor.u32 1.1754944e-38, %v161_v56 }
 0x129   :  { %v255_v16 = vmul.f32 %v1976_v6, %v254_v2  ;;  %v1978_v20 = vpop.eup %1977 }
 0x12a   :  { %v285_v22 = vsel %vm2350_vm12, %v1972_v57, %v281_v7  ;;  %v139_v26 = vadd.f32 %v1974_v62, %v138_v17  ;;  %v293_v28 = vmul.f32 %v1978_v20, %v252_v1  ;;  %vm298_vm6 = vweird.f32 %v1978_v20 }
 0x12b   :  { %v256_v21 = vmul.f32 0.5, %v255_v16  ;;  %v290_v27 = vsel %vm2354_vm13, %v289_v15, %v285_v22  ;;  %v1980_v33 = vpop.eup %1979  ;;  %vm2399_vm8 = vmor %vm297_vm5, %vm298_vm6  ;;  %vm160_vm12 = vcmp.eq.f32.partialorder %v159_v60, 8.507059e+37 }
 0x12c   :  { %v291_v35 = vmul.f32 %v290_v27, %v2237_v29  ;;  %v143_v37 = vsel %vm142_vm4, %v1974_v62, %v139_v26  ;;  %v294_v42 = vsub.f32 1.0, %v293_v28  ;;  %v151_v43 = vmul.f32 %v1980_v33, %v2345_v10 }
 0x12d   :  { %v257_v34 = vsub.f32 1.5, %v256_v21  ;;  %v148_v41 = vsel %vm2358_vm1, %v147_v19, %v143_v37  ;;  %vm156_vm9 = vweird.f32 %v1980_v33 }
 0x12e   :  { %v340_v29 = vmul.f32 %v2368_v23, %v291_v35  ;;  %v149_v44 = vmul.f32 %v148_v41, %v2239_v30  ;;  %v295_v48 = vmul.f32 %v1978_v20, %v294_v42  ;;  %v152_v53 = vsub.f32 1.0, %v151_v43  ;;  %vm157_vm11 = vmor %vm155_vm10, %vm156_vm9 }
 0x12f   :  { %v258_v46 = vmul.f32 %v1976_v6, %v257_v34  ;;  %vm633_vm9 = vcmask 523264  }
 0x130   :  { %v2396_v54 = vadd.f32 %v2377_v36, %v340_v29  ;;  %v168_v55 = vmul.f32 %v1954_v38, %v149_v44  ;;  %v296_v58 = vadd.f32 %v1978_v20, %v295_v48  ;;  %v153_v59 = vmul.f32 %v1980_v33, %v152_v53 }
 0x131   :  { %v259_v57 = vmul.f32 %v258_v46, %v2330_v52 }
 0x132   :  { %1850 = vmatmul.msk.f32.vlgmr.msra.gmra.mxu0 %vm81_vm0, %v2396_v54  ;;  %v173_v61 = vadd.f32 %v1955_v45, %v168_v55  ;;  %v300_v63 = vsel %vm2399_vm8, %v1978_v20, %v296_v58  ;;  %v154_v0 = vadd.f32 %v1980_v33, %v153_v59  ;;  %vm471_vm8 = vcmask 64512  }
 0x133   :  { %v261_v62 = vsel %vm260_vm2, %v2330_v52, %v259_v57  ;;  %v305_v3 = vsel %vm2391_vm7, %v304_v51, %v300_v63 }
 0x134   :  { %v264_v1 = vsel %vm262_vm3, %v263_v47, %v261_v62  ;;  %1854 = vmatmul.msk.f32.vlgmr.msra.gmra.mxu1 %vm81_vm0, %v173_v61  ;;  %v306_v5 = vmul.f32 %v305_v3, %v2249_v39  ;;  %v158_v6 = vsel %vm157_vm11, %v1980_v33, %v154_v0 }
 0x135   :  { %1981 = vrcp.f32 %v264_v1  ;;  %v163_v8 = vsel %vm160_vm12, %v162_v4, %v158_v6  ;;  %v318_v14 = vand.u32 2147483648, %v264_v1  ;;  %vm312_vm13 = vweird.f32 %v264_v1 }
 0x136   :  { %v341_v9 = vmul.f32 %v2368_v23, %v306_v5  ;;  %v164_v10 = vmul.f32 %v163_v8, %v2251_v40  ;;  %v316_v15 = vand.u32 2147483647, %v264_v1 }
 0x137   :  { %v319_v40 = vor.u32 1.1754944e-38, %v318_v14 }
 0x138   :  { %v2423_v52 = vadd.f32 %v2377_v36, %v341_v9  ;;  %v169_v2 = vmul.f32 %v1954_v38, %v164_v10  ;;  %vm317_vm1 = vcmp.eq.f32.partialorder %v316_v15, 8.507059e+37 }
 0x13a   :  { %1851 = vmatmul.msk.f32.gmra.mxu0 %vm81_vm0, %v2423_v52  ;;  %v174_v12 = vadd.f32 %v1955_v45, %v169_v2 }
 0x13b   :  { %v1982_v11 = vpop.eup %1981 }
 0x13c   :  { %v308_v13 = vmul.f32 %v1982_v11, %v264_v1  ;;  %1855 = vmatmul.msk.f32.gmra.mxu1 %vm81_vm0, %v174_v12  ;;  %vm313_vm14 = vweird.f32 %v1982_v11 }
 0x13d   :  { %vm314_vm15 = vmor %vm312_vm13, %vm313_vm14 }
 0x13e   :  { %v309_v39 = vsub.f32 1.0, %v308_v13  ;;  %v601_v13 = vld [vmem:[%s3275_s11] sm:$0xff] }
 0x140   :  { %v310_v16 = vmul.f32 %v1982_v11, %v309_v39 }
 0x142   :  { %v311_v7 = vadd.f32 %v1982_v11, %v310_v16 }
 0x144   :  { %v315_v17 = vsel %vm314_vm15, %v1982_v11, %v311_v7  ;;  %v602_v7 = vld [vmem:[%s3275_s11 + $0x8] sm:$0xff] }
 0x145   :  { %v320_v18 = vsel %vm317_vm1, %v319_v40, %v315_v17 }
 0x146   :  { %v321_v19 = vmul.f32 %v320_v18, %v2264_v50 }
 0x148   :  { %v342_v20 = vmul.f32 %v2368_v23, %v321_v19 }
 0x14a   :  { %v2431_v21 = vadd.f32 %v2377_v36, %v342_v20 }
 0x14c   :  { %1852 = vmatmul.msk.f32.gmra.mxu0 %vm81_vm0, %v2431_v21 }
 0x18e   :  { %v220_v22 = vpop.xlane.xlu2 %219 }
 0x18f   :  { %v224_v26 = vmul.f32 %v220_v22, %v2233_v24 }
 0x191   :  { %v228_v27 = vadd.f32 1e-12, %v224_v26  ;;  %v603_v26 = vld [vmem:[%s3275_s11 + $0x10] sm:$0xff] }
 0x193   :  { %1983 = vrsqrt.f32 %v228_v27  ;;  %vm272_vm2 = vcmp.eq.f32.partialorder %v228_v27, inf  ;;  %v275_v37 = vand.u32 2147483648, %v228_v27  ;;  %vm274_vm3 = vcmp.eq.f32.partialorder %v228_v27, 0.0 }
 0x199   :  { %v1984_v28 = vpop.eup %1983 }
 0x19a   :  { %v266_v31 = vmul.f32 %v1984_v28, %v228_v27 }
 0x19c   :  { %v267_v32 = vmul.f32 %v1984_v28, %v266_v31 }
 0x19e   :  { %v268_v33 = vmul.f32 0.5, %v267_v32 }
 0x1a0   :  { %v269_v34 = vsub.f32 1.5, %v268_v33 }
 0x1a2   :  { %v270_v35 = vmul.f32 %v1984_v28, %v269_v34  ;;  %v604_v34 = vld [vmem:[%s3275_s11 + $0x18] sm:$0xff] }
 0x1a4   :  { %v271_v50 = vmul.f32 %v270_v35, %v228_v27 }
 0x1a6   :  { %v273_v38 = vsel %vm272_vm2, %v228_v27, %v271_v50 }
 0x1a7   :  { %v276_v41 = vsel %vm274_vm3, %v275_v37, %v273_v38 }
 0x1a8   :  { %1985 = vrcp.f32 %v276_v41  ;;  %v333_v24 = vand.u32 2147483648, %v276_v41  ;;  %v331_v46 = vand.u32 2147483647, %v276_v41  ;;  %vm327_vm5 = vweird.f32 %v276_v41 }
 0x1aa   :  { %v334_v48 = vor.u32 1.1754944e-38, %v333_v24  ;;  %vm332_vm7 = vcmp.eq.f32.partialorder %v331_v46, 8.507059e+37  ;;  %v606_v46 = vld [vmem:[%s3275_s11 + $0x28] sm:$0xff] }
 0x1ae   :  { %v1986_v42 = vpop.eup %1985 }
 0x1af   :  { %v323_v43 = vmul.f32 %v1986_v42, %v276_v41  ;;  %vm328_vm4 = vweird.f32 %v1986_v42  ;;  %v384_v49 = vpop.f32.mrf.mxu0 }
 0x1b0   :  { %vm329_vm6 = vmor %vm327_vm5, %vm328_vm4 }
 0x1b1   :  { %v324_v29 = vsub.f32 1.0, %v323_v43  ;;  %v2436_v44 = vpop.f32.mrf.mxu1 }
 0x1b2   :  { %467 = vrot.lane.b32.xlu1 %v2436_v44, %s2078_s28 }
 0x1b3   :  { %v325_v45 = vmul.f32 %v1986_v42, %v324_v29 }
 0x1b5   :  { %v326_v47 = vadd.f32 %v1986_v42, %v325_v45 }
 0x1b7   :  { %v330_v51 = vsel %vm329_vm6, %v1986_v42, %v326_v47  ;;  %v605_v42 = vld [vmem:[%s3275_s11 + $0x20] sm:$0xff] }
 0x1b8   :  { %v335_v53 = vsel %vm332_vm7, %v334_v48, %v330_v51 }
 0x1b9   :  { %v336_v55 = vmul.f32 %v335_v53, %v2313_v25  ;;  %v2441_v30 = vpop.f32.mrf.mxu1  ;;  %v387_v25 = vpop.f32.mrf.mxu0  ;;  %v607_v53 = vld [vmem:[%s3275_s11 + $0x30] sm:$0xff] }
 0x1ba   :  { %459 = vrot.lane.b32.xlu1 %v2436_v44, %s2079_s30  ;;  %469 = vrot.lane.b32.xlu0 %v2441_v30, %s2078_s28 }
 0x1bb   :  { %v343_v56 = vmul.f32 %v2368_v23, %v336_v55  ;;  %465 = vrot.lane.b32.xlu2 %v2441_v30, %s2080_s29 }
 0x1bd   :  { %v2451_v57 = vadd.f32 %v2377_v36, %v343_v56 }
 0x1bf   :  { %1853 = vmatmul.msk.f32.gmra.mxu0 %vm81_vm0, %v2451_v57 }
 0x1c2   :  { %463 = vrot.lane.b32.xlu0 %v2436_v44, %s2080_s29 }
 0x1c3   :  { %461 = vrot.lane.b32.xlu2 %v2441_v30, %s2079_s30 }
 0x1c9   :  { %v390_v23 = vpop.f32.mrf.mxu0 }
 0x1ca   :  { %437 = vrot.lane.b32.xlu1 %v390_v23, %s2079_s30  ;;  %433 = vrot.lane.b32.xlu0 %v384_v49, %s2079_s30 }
 0x1cb   :  { %435 = vrot.lane.b32.xlu2 %v387_v25, %s2079_s30 }
 0x1d2   :  { %443 = vrot.lane.b32.xlu1 %v387_v25, %s2080_s29 }
 0x1d3   :  { %441 = vrot.lane.b32.xlu2 %v384_v49, %s2080_s29 }
 0x1da   :  { %449 = vrot.lane.b32.xlu1 %v384_v49, %s2078_s28 }
 0x215   :  { %v2465_v36 = vpop.permute.xlu2 %465 }
 0x21d   :  { %v2469_v59 = vpop.permute.xlu2 %461 }
 0x224   :  { %v2467_v58 = vpop.permute.xlu1 %467 }
 0x225   :  { %v436_v5 = vpop.permute.xlu2 %435 }
 0x22c   :  { %v2471_v60 = vpop.permute.xlu1 %459  ;;  %v2475_v62 = vpop.permute.xlu0 %469 }
 0x22d   :  { %v1932_v61 = vpack.i.bf16 %v2471_v60, %v2469_v59  ;;  %v1922_v63 = vpack.i.bf16 %v2467_v58, %v2475_v62  ;;  %1856 = vmatpush.xpose.msk.msra.mxu2 %vm471_vm8, %v2475_v62  ;;  %v442_v9 = vpop.permute.xlu2 %441 }
 0x231   :  { %1857 = vmatpush.xpose.msk.msra.mxu2 %vm471_vm8, %v2467_v58 }
 0x234   :  { %v2483_v0 = vpop.permute.xlu0 %463 }
 0x235   :  { %v1927_v1 = vpack.i.bf16 %v2483_v0, %v2465_v36  ;;  %1858 = vmatpush.xpose.msk.msra.mxu2 %vm471_vm8, %v2465_v36 }
 0x239   :  { %1859 = vmatpush.xpose.msk.msra.mxu2 %vm471_vm8, %v2483_v0 }
 0x23c   :  { %v393_v3 = vpop.f32.mrf.mxu0  ;;  %v434_v4 = vpop.permute.xlu0 %433 }
 0x23d   :  { %455 = vrot.lane.b32.xlu1 %v393_v3, %s2078_s28  ;;  %447 = vrot.lane.b32.xlu2 %v393_v3, %s2080_s29  ;;  %v438_v6 = vpop.permute.xlu1 %437 }
 0x23e   :  { %439 = vrot.lane.b32.xlu0 %v393_v3, %s2079_s30  ;;  %1860 = vmatpush.xpose.msk.msra.mxu2 %vm471_vm8, %v2469_v59  ;;  %v610_v59 = vld [vmem:[%s3275_s11 + $0x48] sm:$0xff]  ;;  %s2083_s30 = smov 16  }
 0x242   :  { %1861 = vmatpush.xpose.msk.msra.mxu2 %vm471_vm8, %v2471_v60 }
 0x245   :  { %453 = vrot.lane.b32.xlu2 %v390_v23, %s2078_s28  ;;  %v444_v10 = vpop.permute.xlu1 %443 }
 0x246   :  { %445 = vrot.lane.b32.xlu0 %v390_v23, %s2080_s29  ;;  %1862 = vmatpush.xpose.msk.msra.mxu2 %vm471_vm8, %v2441_v30  ;;  %s2084_s29 = smov 24  }
 0x24a   :  { %1863 = vmatpush.xpose.msk.msra.mxu2 %vm471_vm8, %v2436_v44 }
 0x24d   :  { %1864 = vmatmul.msk.f32.vlgmr.msra.gmra.mxu2 %vm471_vm8, %v384_v49  ;;  %v450_v16 = vpop.permute.xlu1 %449 }
 0x24e   :  { %451 = vrot.lane.b32.xlu0 %v387_v25, %s2078_s28 }
 0x255   :  { %1865 = vmatmul.msk.f32.gmra.mxu2 %vm471_vm8, %v387_v25 }
 0x25d   :  { %1866 = vmatmul.msk.f32.gmra.mxu2 %vm471_vm8, %v390_v23 }
 0x265   :  { %1867 = vmatmul.msk.f32.gmra.mxu2 %vm471_vm8, %v393_v3 }
 0x26d   :  { %1868 = vmatmul.msk.f32.gmra.mxu2 %vm471_vm8, %v434_v4  ;;  %v608_v4 = vld [vmem:[%s3275_s11 + $0x38] sm:$0xff] }
 0x275   :  { %1869 = vmatmul.msk.f32.gmra.mxu2 %vm471_vm8, %v436_v5 }
 0x27d   :  { %1870 = vmatmul.msk.f32.gmra.mxu2 %vm471_vm8, %v438_v6  ;;  %v609_v6 = vld [vmem:[%s3275_s11 + $0x40] sm:$0xff] }
 0x297   :  { %v448_v11 = vpop.permute.xlu2 %447 }
 0x29f   :  { %v454_v32 = vpop.permute.xlu2 %453 }
 0x2af   :  { %v456_v38 = vpop.permute.xlu1 %455 }
 0x2b0   :  { %v440_v8 = vpop.permute.xlu0 %439 }
 0x2b1   :  { %1871 = vmatmul.msk.f32.gmra.mxu2 %vm471_vm8, %v440_v8 }
 0x2b8   :  { %v446_v2 = vpop.permute.xlu0 %445 }
 0x2b9   :  { %1872 = vmatmul.msk.f32.gmra.mxu2 %vm471_vm8, %v442_v9 }
 0x2c0   :  { %v452_v20 = vpop.permute.xlu0 %451 }
 0x2c1   :  { %1873 = vmatmul.msk.f32.gmra.mxu2 %vm471_vm8, %v444_v10 }
 0x2c9   :  { %1874 = vmatmul.msk.f32.gmra.mxu2 %vm471_vm8, %v446_v2 }
 0x2d0   :  { %v537_v12 = vpop.f32.mrf.mxu2 }
 0x2d1   :  { %1875 = vmatmul.msk.f32.gmra.mxu2 %vm471_vm8, %v448_v11  ;;  %v585_v14 = vmul.f32 0.35355338, %v537_v12 }
 0x2d3   :  { %v2520_v39 = vadd.f32 %v601_v13, %v585_v14 }
 0x2d5   :  { %v634_v15 = vsel %vm633_vm9, %v2520_v39, -inf }
 0x2d6   :  { %635 = vmax.xlane.f32.xlu0 %v634_v15  ;;  %v1937_v15 = vpack.i.bf16 %v2436_v44, %v2441_v30  ;;  %v611_v30 = vld [vmem:[%s3275_s11 + $0x50] sm:$0xff] }
 0x2d8   :  { %v540_v40 = vpop.f32.mrf.mxu2 }
 0x2d9   :  { %1876 = vmatmul.msk.f32.gmra.mxu2 %vm471_vm8, %v450_v16  ;;  %v586_v17 = vmul.f32 0.35355338, %v540_v40 }
 0x2db   :  { %v618_v18 = vadd.f32 %v602_v7, %v586_v17 }
 0x2dd   :  { %v637_v19 = vsel %vm633_vm9, %v618_v18, -inf }
 0x2de   :  { %638 = vmax.xlane.f32.xlu2 %v637_v19 }
 0x2e0   :  { %v543_v22 = vpop.f32.mrf.mxu2 }
 0x2e1   :  { %1877 = vmatmul.msk.f32.gmra.mxu2 %vm471_vm8, %v452_v20  ;;  %v587_v27 = vmul.f32 0.35355338, %v543_v22 }
 0x2e3   :  { %v2533_v28 = vadd.f32 %v603_v26, %v587_v27 }
 0x2e5   :  { %v640_v31 = vsel %vm633_vm9, %v2533_v28, -inf }
 0x2e6   :  { %641 = vmax.xlane.f32.xlu1 %v640_v31 }
 0x2e8   :  { %v546_v33 = vpop.f32.mrf.mxu2 }
 0x2e9   :  { %1878 = vmatmul.msk.f32.gmra.mxu2 %vm471_vm8, %v454_v32  ;;  %v588_v35 = vmul.f32 0.35355338, %v546_v33 }
 0x2eb   :  { %v2541_v50 = vadd.f32 %v604_v34, %v588_v35 }
 0x2ed   :  { %v643_v37 = vsel %vm633_vm9, %v2541_v50, -inf }
 0x2ee   :  { %644 = vmax.xlane.f32.xlu0 %v643_v37 }
 0x2f0   :  { %v549_v41 = vpop.f32.mrf.mxu2 }
 0x2f1   :  { %1879 = vmatmul.msk.f32.gmra.mxu2 %vm471_vm8, %v456_v38  ;;  %v589_v43 = vmul.f32 0.35355338, %v549_v41  ;;  %v612_v41 = vld [vmem:[%s3275_s11 + $0x58] sm:$0xff] }
 0x2f3   :  { %v621_v29 = vadd.f32 %v605_v42, %v589_v43 }
 0x2f5   :  { %v646_v24 = vsel %vm633_vm9, %v621_v29, -inf }
 0x2f6   :  { %647 = vmax.xlane.f32.xlu2 %v646_v24 }
 0x2f8   :  { %v552_v45 = vpop.f32.mrf.mxu2 }
 0x2f9   :  { %v590_v47 = vmul.f32 0.35355338, %v552_v45 }
 0x2fb   :  { %v2553_v48 = vadd.f32 %v606_v46, %v590_v47 }
 0x2fd   :  { %v649_v49 = vsel %vm633_vm9, %v2553_v48, -inf }
 0x2fe   :  { %650 = vmax.xlane.f32.xlu1 %v649_v49 }
 0x300   :  { %v555_v51 = vpop.f32.mrf.mxu2 }
 0x301   :  { %v591_v55 = vmul.f32 0.35355338, %v555_v51 }
 0x303   :  { %v2560_v56 = vadd.f32 %v607_v53, %v591_v55 }
 0x305   :  { %v652_v25 = vsel %vm633_vm9, %v2560_v56, -inf }
 0x306   :  { %653 = vmax.xlane.f32.xlu0 %v652_v25 }
 0x317   :  { %1928 = vrot.lane.b32.xlu1 %v1927_v1, %s2081_s3 }
 0x31a   :  { %1923 = vrot.lane.b32.xlu0 %v1922_v63, %s2081_s3 }
 0x334   :  { %v558_v23 = vpop.f32.mrf.mxu2 }
 0x335   :  { %v592_v3 = vmul.f32 0.35355338, %v558_v23  ;;  %v615_v23 = vld [vmem:[%s3275_s11 + $0x70] sm:$0xff] }
 0x337   :  { %v2578_v9 = vadd.f32 %v608_v4, %v592_v3 }
 0x339   :  { %v655_v58 = vsel %vm633_vm9, %v2578_v9, -inf }
 0x33c   :  { %v561_v5 = vpop.f32.mrf.mxu2 }
 0x33d   :  { %v593_v8 = vmul.f32 0.35355338, %v561_v5 }
 0x33f   :  { %v2580_v36 = vadd.f32 %v609_v6, %v593_v8 }
 0x341   :  { %v658_v62 = vsel %vm633_vm9, %v2580_v36, -inf  ;;  %656 = vmax.xlane.f32.xlu1 %v655_v58  ;;  %v614_v58 = vld [vmem:[%s3275_s11 + $0x68] sm:$0xff] }
 0x342   :  { %659 = vmax.xlane.f32.xlu2 %v658_v62 }
 0x344   :  { %v564_v10 = vpop.f32.mrf.mxu2 }
 0x345   :  { %v594_v47 = vmul.f32 0.35355338, %v564_v10 }
 0x347   :  { %v2630_v51 = vadd.f32 %v610_v59, %v594_v47 }
 0x349   :  { %v636_v63 = vpop.xlane.xlu0 %635 }
 0x34a   :  { %v682_v0 = vsub.f32 %v2520_v39, %v636_v63 }
 0x34c   :  { %v698_v1 = vmul.f32 1.442695, %v682_v0  ;;  %v567_v40 = vpop.f32.mrf.mxu2 }
 0x34d   :  { %v595_v22 = vmul.f32 0.35355338, %v567_v40 }
 0x34e   :  { %1987 = vpow2.f32 %v698_v1 }
 0x34f   :  { %v2606_v27 = vadd.f32 %v611_v30, %v595_v22 }
 0x351   :  { %v639_v2 = vpop.xlane.xlu2 %638  ;;  %v664_v32 = vsel %vm633_vm9, %v2606_v27, -inf }
 0x352   :  { %v683_v11 = vsub.f32 %v618_v18, %v639_v2 }
 0x354   :  { %v2587_v12 = vpop.eup %1987  ;;  %v700_v13 = vmul.f32 1.442695, %v683_v11  ;;  %v570_v20 = vpop.f32.mrf.mxu2 }
 0x355   :  { %v730_v14 = vsel %vm633_vm9, %v2587_v12, 0.0  ;;  %v596_v37 = vmul.f32 0.35355338, %v570_v20 }
 0x356   :  { %1989 = vpow2.f32 %v700_v13  ;;  %731 = vadd.xlane.f32.xlu2 %v730_v14 }
 0x357   :  { %v2621_v24 = vadd.f32 %v612_v41, %v596_v37 }
 0x359   :  { %v642_v16 = vpop.xlane.xlu1 %641  ;;  %v667_v60 = vsel %vm633_vm9, %v2621_v24, -inf }
 0x35a   :  { %v684_v39 = vsub.f32 %v2533_v28, %v642_v16  ;;  %1938 = vrot.lane.b32.xlu1 %v1937_v15, %s2081_s3 }
 0x35c   :  { %v2595_v7 = vpop.eup %1989  ;;  %v702_v17 = vmul.f32 1.442695, %v684_v39  ;;  %v573_v33 = vpop.f32.mrf.mxu2  ;;  %v613_v39 = vld [vmem:[%s3275_s11 + $0x60] sm:$0xff] }
 0x35d   :  { %v733_v18 = vsel %vm633_vm9, %v2595_v7, 0.0  ;;  %v597_v16 = vmul.f32 0.35355338, %v573_v33 }
 0x35e   :  { %1991 = vpow2.f32 %v702_v17  ;;  %734 = vadd.xlane.f32.xlu2 %v733_v18 }
 0x35f   :  { %v2664_v17 = vadd.f32 %v613_v39, %v597_v16 }
 0x361   :  { %v645_v34 = vpop.xlane.xlu0 %644  ;;  %v670_v18 = vsel %vm633_vm9, %v2664_v17, -inf }
 0x362   :  { %v685_v62 = vsub.f32 %v2541_v50, %v645_v34 }
 0x364   :  { %v2599_v19 = vpop.eup %1991  ;;  %v576_v43 = vpop.f32.mrf.mxu2  ;;  %v704_v11 = vmul.f32 1.442695, %v685_v62 }
 0x365   :  { %v736_v44 = vsel %vm633_vm9, %v2599_v19, 0.0  ;;  %v598_v5 = vmul.f32 0.35355338, %v576_v43 }
 0x366   :  { %737 = vadd.xlane.f32.xlu0 %v736_v44 }
 0x367   :  { %v2653_v2 = vadd.f32 %v614_v58, %v598_v5 }
 0x369   :  { %v648_v26 = vpop.xlane.xlu2 %647  ;;  %v673_v14 = vsel %vm633_vm9, %v2653_v2, -inf }
 0x36a   :  { %v686_v28 = vsub.f32 %v621_v29, %v648_v26 }
 0x36c   :  { %v706_v31 = vmul.f32 1.442695, %v686_v28  ;;  %v579_v53 = vpop.f32.mrf.mxu2 }
 0x36e   :  { %1993 = vpow2.f32 %v706_v31  ;;  %665 = vmax.xlane.f32.xlu0 %v664_v32 }
 0x371   :  { %v651_v42 = vpop.xlane.xlu1 %650 }
 0x372   :  { %v687_v45 = vsub.f32 %v2553_v48, %v651_v42  ;;  %v661_v48 = vsel %vm633_vm9, %v2630_v51, -inf }
 0x374   :  { %v2610_v35 = vpop.eup %1993  ;;  %v582_v31 = vpop.f32.mrf.mxu2 }
 0x375   :  { %v742_v38 = vsel %vm633_vm9, %v2610_v35, 0.0  ;;  %v600_v34 = vmul.f32 0.35355338, %v582_v31 }
 0x376   :  { %743 = vadd.xlane.f32.xlu0 %v742_v38  ;;  %1933 = vrot.lane.b32.xlu2 %v1932_v61, %s2081_s3  ;;  %v708_v61 = vmul.f32 1.442695, %v687_v45  ;;  %v616_v38 = vld [vmem:[%s3275_s11 + $0x78] sm:$0xff]  ;;  %s2082_s11 = smov 8  }
 0x379   :  { %v654_v29 = vpop.xlane.xlu0 %653 }
 0x37a   :  { %v688_v46 = vsub.f32 %v2560_v56, %v654_v29  ;;  %v599_v56 = vmul.f32 0.35355338, %v579_v53 }
 0x37c   :  { %v710_v49 = vmul.f32 1.442695, %v688_v46  ;;  %v2643_v4 = vadd.f32 %v615_v23, %v599_v56 }
 0x37e   :  { %1995 = vpow2.f32 %v710_v49  ;;  %668 = vmax.xlane.f32.xlu0 %v667_v60  ;;  %v676_v63 = vsel %vm633_vm9, %v2643_v4, -inf }
 0x37f   :  { %1997 = vpow2.f32 %v708_v61 }
 0x380   :  { %1999 = vpow2.f32 %v704_v11 }
 0x384   :  { %v2634_v55 = vpop.eup %1995  ;;  %662 = vmax.xlane.f32.xlu1 %v661_v48 }
 0x385   :  { %v748_v25 = vsel %vm633_vm9, %v2634_v55, 0.0  ;;  %v2641_v3 = vpop.eup %1997 }
 0x386   :  { %749 = vadd.xlane.f32.xlu0 %v748_v25  ;;  %v745_v6 = vsel %vm633_vm9, %v2641_v3, 0.0  ;;  %v2657_v50 = vpop.eup %1999 }
 0x387   :  { %v739_v40 = vsel %vm633_vm9, %v2657_v50, 0.0 }
 0x389   :  { %v1929_v1 = vpop.permute.xlu1 %1928 }
 0x38a   :  { %v1930_v13 = vunpack.i.l.bf16 %v1929_v1  ;;  %v1931_v15 = vunpack.i.h.bf16 %v1929_v1 }
 0x38c   :  { %746 = vadd.xlane.f32.xlu1 %v745_v6  ;;  %v1924_v8 = vpop.permute.xlu0 %1923 }
 0x38d   :  { %v1925_v0 = vunpack.i.l.bf16 %v1924_v8  ;;  %v1926_v10 = vunpack.i.h.bf16 %v1924_v8 }
 0x38e   :  { %677 = vmax.xlane.f32.xlu0 %v676_v63 }
 0x38f   :  { %1098 = vmatpush.msra.mxu3 %v1925_v0 }
 0x391   :  { %1099 = vmatpush.msra.mxu3 %v1926_v10 }
 0x393   :  { %1100 = vmatpush.msra.mxu3 %v1930_v13 }
 0x394   :  { %674 = vmax.xlane.f32.xlu1 %v673_v14 }
 0x395   :  { %1101 = vmatpush.msra.mxu3 %v1931_v15 }
 0x39f   :  { %740 = vadd.xlane.f32.xlu2 %v739_v40 }
 0x3a7   :  { %671 = vmax.xlane.f32.xlu2 %v670_v18 }
 0x3b4   :  { %v657_v20 = vpop.xlane.xlu1 %656 }
 0x3b5   :  { %v660_v22 = vpop.xlane.xlu2 %659  ;;  %v689_v44 = vsub.f32 %v2578_v9, %v657_v20 }
 0x3b6   :  { %v690_v30 = vsub.f32 %v2580_v36, %v660_v22  ;;  %v2681_v36 = vadd.f32 %v616_v38, %v600_v34 }
 0x3b7   :  { %v712_v26 = vmul.f32 1.442695, %v689_v44 }
 0x3b8   :  { %v714_v28 = vmul.f32 1.442695, %v690_v30  ;;  %v679_v41 = vsel %vm633_vm9, %v2681_v36, -inf }
 0x3b9   :  { %2001 = vpow2.f32 %v712_v26 }
 0x3ba   :  { %2003 = vpow2.f32 %v714_v28 }
 0x3bf   :  { %v2670_v32 = vpop.eup %2001 }
 0x3c0   :  { %v2672_v33 = vpop.eup %2003  ;;  %v751_v37 = vsel %vm633_vm9, %v2670_v32, 0.0 }
 0x3c1   :  { %752 = vadd.xlane.f32.xlu2 %v751_v37  ;;  %v754_v9 = vsel %vm633_vm9, %v2672_v33, 0.0 }
 0x3c2   :  { %755 = vadd.xlane.f32.xlu1 %v754_v9 }
 0x3c9   :  { %v732_v42 = vpop.xlane.xlu2 %731  ;;  %680 = vmax.xlane.f32.xlu2 %v679_v41 }
 0x3ca   :  { %2005 = vrcp.f32 %v732_v42  ;;  %v789_v60 = vand.u32 2147483648, %v732_v42  ;;  %vm783_vm11 = vweird.f32 %v732_v42  ;;  %v787_v56 = vand.u32 2147483647, %v732_v42 }
 0x3cc   :  { %v1939_v23 = vpop.permute.xlu1 %1938  ;;  %v790_v8 = vor.u32 1.1754944e-38, %v789_v60  ;;  %vm788_vm13 = vcmp.eq.f32.partialorder %v787_v56, 8.507059e+37 }
 0x3cd   :  { %v1940_v63 = vunpack.i.l.bf16 %v1939_v23  ;;  %v1941_v13 = vunpack.i.h.bf16 %v1939_v23 }
 0x3d0   :  { %v2006_v43 = vpop.eup %2005 }
 0x3d1   :  { %v779_v29 = vmul.f32 %v2006_v43, %v732_v42  ;;  %v735_v45 = vpop.xlane.xlu2 %734  ;;  %vm784_vm10 = vweird.f32 %v2006_v43 }
 0x3d2   :  { %2007 = vrcp.f32 %v735_v45  ;;  %vm785_vm12 = vmor %vm783_vm11, %vm784_vm10  ;;  %v804_v11 = vand.u32 2147483648, %v735_v45  ;;  %vm798_vm15 = vweird.f32 %v735_v45  ;;  %v802_v40 = vand.u32 2147483647, %v735_v45 }
 0x3d3   :  { %v780_v46 = vsub.f32 1.0, %v779_v29 }
 0x3d4   :  { %v805_v22 = vor.u32 1.1754944e-38, %v804_v11  ;;  %vm803_vm2 = vcmp.eq.f32.partialorder %v802_v40, 8.507059e+37 }
 0x3d5   :  { %v781_v47 = vmul.f32 %v2006_v43, %v780_v46 }
 0x3d7   :  { %v782_v49 = vadd.f32 %v2006_v43, %v781_v47 }
 0x3d8   :  { %v2008_v59 = vpop.eup %2007 }
 0x3d9   :  { %v794_v61 = vmul.f32 %v2008_v59, %v735_v45  ;;  %v1934_v53 = vpop.permute.xlu2 %1933  ;;  %v738_v48 = vpop.xlane.xlu0 %737  ;;  %v786_v6 = vsel %vm785_vm12, %v2006_v43, %v782_v49  ;;  %vm799_vm14 = vweird.f32 %v2008_v59 }
 0x3da   :  { %2009 = vrcp.f32 %v738_v48  ;;  %v1935_v25 = vunpack.i.l.bf16 %v1934_v53  ;;  %v1936_v58 = vunpack.i.h.bf16 %v1934_v53  ;;  %v791_v0 = vsel %vm788_vm13, %v790_v8, %v786_v6  ;;  %vm800_vm1 = vmor %vm798_vm15, %vm799_vm14 }
 0x3db   :  { %v795_v5 = vsub.f32 1.0, %v794_v61  ;;  %v792_v16 = vmul.f32 %v2587_v12, %v791_v0  ;;  %v819_v31 = vand.u32 2147483648, %v738_v48  ;;  %vm813_vm4 = vweird.f32 %v738_v48 }
 0x3dc   :  { %1102 = vmatpush.msra.mxu3 %v1935_v25  ;;  %v817_v34 = vand.u32 2147483647, %v738_v48 }
 0x3dd   :  { %v796_v62 = vmul.f32 %v2008_v59, %v795_v5  ;;  %v820_v9 = vor.u32 1.1754944e-38, %v819_v31 }
 0x3de   :  { %1103 = vmatpush.msra.mxu3 %v1936_v58  ;;  %vm818_vm6 = vcmp.eq.f32.partialorder %v817_v34, 8.507059e+37 }
 0x3df   :  { %v797_v1 = vadd.f32 %v2008_v59, %v796_v62 }
 0x3e0   :  { %v2010_v10 = vpop.eup %2009  ;;  %1104 = vmatpush.msra.mxu3 %v1940_v63 }
 0x3e1   :  { %v809_v14 = vmul.f32 %v2010_v10, %v738_v48  ;;  %v666_v15 = vpop.xlane.xlu0 %665  ;;  %v801_v20 = vsel %vm800_vm1, %v2008_v59, %v797_v1  ;;  %vm814_vm3 = vweird.f32 %v2010_v10 }
 0x3e2   :  { %v692_v39 = vsub.f32 %v2606_v27, %v666_v15  ;;  %1105 = vmatpush.msra.mxu3 %v1941_v13  ;;  %v806_v26 = vsel %vm803_vm2, %v805_v22, %v801_v20  ;;  %vm815_vm5 = vmor %vm813_vm4, %vm814_vm3 }
 0x3e3   :  { %v810_v18 = vsub.f32 1.0, %v809_v14  ;;  %1880 = vmatmul.msk.f32.vlgmr.msra.gmra.mxu3 %vm633_vm9, %v792_v16  ;;  %v807_v27 = vmul.f32 %v2595_v7, %v806_v26 }
 0x3e4   :  { %v718_v44 = vmul.f32 1.442695, %v692_v39 }
 0x3e5   :  { %v811_v30 = vmul.f32 %v2010_v10, %v810_v18 }
 0x3e6   :  { %2011 = vpow2.f32 %v718_v44 }
 0x3e7   :  { %v812_v28 = vadd.f32 %v2010_v10, %v811_v30 }
 0x3e9   :  { %v2688_v12 = vpop.xlane.xlu0 %743  ;;  %v816_v37 = vsel %vm815_vm5, %v2010_v10, %v812_v28 }
 0x3ea   :  { %v821_v42 = vsel %vm818_vm6, %v820_v9, %v816_v37  ;;  %vm843_vm14 = vweird.f32 %v2688_v12  ;;  %v847_v9 = vand.u32 2147483647, %v2688_v12 }
 0x3eb   :  { %1881 = vmatmul.msk.f32.gmra.mxu3 %vm633_vm9, %v807_v27  ;;  %v822_v29 = vmul.f32 %v2599_v19, %v821_v42  ;;  %v849_v27 = vand.u32 2147483648, %v2688_v12 }
 0x3ec   :  { %v2692_v38 = vpop.eup %2011  ;;  %vm848_vm1 = vcmp.eq.f32.partialorder %v847_v9, 8.507059e+37 }
 0x3ed   :  { %v760_v41 = vsel %vm633_vm9, %v2692_v38, 0.0 }
 0x3ee   :  { %761 = vadd.xlane.f32.xlu1 %v760_v41 }
 0x3f1   :  { %v669_v43 = vpop.xlane.xlu0 %668 }
 0x3f2   :  { %v693_v45 = vsub.f32 %v2621_v24, %v669_v43 }
 0x3f3   :  { %1882 = vmatmul.msk.f32.gmra.mxu3 %vm633_vm9, %v822_v29 }
 0x3f4   :  { %v720_v7 = vmul.f32 1.442695, %v693_v45 }
 0x3f6   :  { %2013 = vpow2.f32 %v720_v7  ;;  %v850_v7 = vor.u32 1.1754944e-38, %v849_v27 }
 0x3f7   :  { %v663_v46 = vpop.xlane.xlu1 %662 }
 0x3f8   :  { %v691_v47 = vsub.f32 %v2630_v51, %v663_v46 }
 0x3f9   :  { %v2700_v49 = vpop.xlane.xlu0 %749 }
 0x3fa   :  { %v716_v59 = vmul.f32 1.442695, %v691_v47 }
 0x3fc   :  { %v2702_v60 = vpop.eup %2013  ;;  %2015 = vpow2.f32 %v716_v59 }
 0x3fd   :  { %v763_v61 = vsel %vm633_vm9, %v2702_v60, 0.0 }
 0x3fe   :  { %764 = vadd.xlane.f32.xlu2 %v763_v61 }
 0x3ff   :  { %v2706_v19 = vpop.xlane.xlu1 %746 }
 0x400   :  { %vm858_vm3 = vweird.f32 %v2706_v19  ;;  %v862_v61 = vand.u32 2147483647, %v2706_v19 }
 0x401   :  { %v678_v24 = vpop.xlane.xlu0 %677 }
 0x402   :  { %v2708_v53 = vpop.eup %2015  ;;  %v696_v48 = vsub.f32 %v2643_v4, %v678_v24  ;;  %vm863_vm5 = vcmp.eq.f32.partialorder %v862_v61, 8.507059e+37 }
 0x403   :  { %v757_v51 = vsel %vm633_vm9, %v2708_v53, 0.0 }
 0x404   :  { %v726_v56 = vmul.f32 1.442695, %v696_v48  ;;  %758 = vadd.xlane.f32.xlu0 %v757_v51 }
 0x406   :  { %2017 = vpow2.f32 %v726_v56 }
 0x407   :  { %v675_v25 = vpop.xlane.xlu1 %674  ;;  %2019 = vrcp.f32 %v2688_v12 }
 0x408   :  { %v695_v23 = vsub.f32 %v2653_v2, %v675_v25 }
 0x40a   :  { %v724_v5 = vmul.f32 1.442695, %v695_v23  ;;  %v879_v23 = vand.u32 2147483648, %v2700_v49 }
 0x40c   :  { %v2715_v6 = vpop.eup %2017  ;;  %2021 = vpow2.f32 %v724_v5 }
 0x40d   :  { %v772_v8 = vsel %vm633_vm9, %v2715_v6, 0.0  ;;  %v2020_v4 = vpop.eup %2019 }
 0x40e   :  { %773 = vadd.xlane.f32.xlu2 %v772_v8  ;;  %v839_v2 = vmul.f32 %v2020_v4, %v2688_v12  ;;  %vm844_vm12 = vweird.f32 %v2020_v4  ;;  %v864_v12 = vand.u32 2147483648, %v2706_v19 }
 0x40f   :  { %vm845_vm15 = vmor %vm843_vm14, %vm844_vm12 }
 0x410   :  { %v840_v1 = vsub.f32 1.0, %v839_v2  ;;  %v865_v51 = vor.u32 1.1754944e-38, %v864_v12 }
 0x412   :  { %v2719_v58 = vpop.eup %2021  ;;  %v741_v62 = vpop.xlane.xlu2 %740  ;;  %v841_v16 = vmul.f32 %v2020_v4, %v840_v1 }
 0x413   :  { %2023 = vrcp.f32 %v741_v62  ;;  %v769_v63 = vsel %vm633_vm9, %v2719_v58, 0.0  ;;  %v834_v40 = vand.u32 2147483648, %v741_v62  ;;  %v832_v22 = vand.u32 2147483647, %v741_v62 }
 0x414   :  { %770 = vadd.xlane.f32.xlu1 %v769_v63  ;;  %2025 = vrcp.f32 %v2706_v19  ;;  %vm828_vm10 = vweird.f32 %v741_v62 }
 0x415   :  { %2027 = vrcp.f32 %v2700_v49  ;;  %v835_v30 = vor.u32 1.1754944e-38, %v834_v40  ;;  %vm833_vm13 = vcmp.eq.f32.partialorder %v832_v22, 8.507059e+37 }
 0x419   :  { %v2024_v0 = vpop.eup %2023 }
 0x41a   :  { %v824_v10 = vmul.f32 %v2024_v0, %v741_v62  ;;  %v672_v11 = vpop.xlane.xlu2 %671  ;;  %v2026_v13 = vpop.eup %2025  ;;  %vm829_vm7 = vweird.f32 %v2024_v0  ;;  %v880_v62 = vor.u32 1.1754944e-38, %v879_v23 }
 0x41b   :  { %v694_v14 = vsub.f32 %v2664_v17, %v672_v11  ;;  %v854_v18 = vmul.f32 %v2026_v13, %v2706_v19  ;;  %vm830_vm11 = vmor %vm828_vm10, %vm829_vm7  ;;  %v842_v17 = vadd.f32 %v2020_v4, %v841_v16  ;;  %v2028_v31 = vpop.eup %2027  ;;  %vm859_vm2 = vweird.f32 %v2026_v13 }
 0x41c   :  { %v825_v15 = vsub.f32 1.0, %v824_v10  ;;  %v869_v42 = vmul.f32 %v2028_v31, %v2700_v49  ;;  %vm860_vm4 = vmor %vm858_vm3, %vm859_vm2  ;;  %vm874_vm6 = vweird.f32 %v2028_v31  ;;  %vm873_vm7 = vweird.f32 %v2700_v49 }
 0x41d   :  { %v722_v39 = vmul.f32 1.442695, %v694_v14  ;;  %v855_v26 = vsub.f32 1.0, %v854_v18  ;;  %v846_v45 = vsel %vm845_vm15, %v2020_v4, %v842_v17  ;;  %vm875_vm10 = vmor %vm873_vm7, %vm874_vm6 }
 0x41e   :  { %v826_v20 = vmul.f32 %v2024_v0, %v825_v15  ;;  %v851_v46 = vsel %vm848_vm1, %v850_v7, %v846_v45  ;;  %v870_v47 = vsub.f32 1.0, %v869_v42 }
 0x41f   :  { %2029 = vpow2.f32 %v722_v39  ;;  %v856_v43 = vmul.f32 %v2026_v13, %v855_v26  ;;  %v852_v59 = vmul.f32 %v2610_v35, %v851_v46  ;;  %v877_v35 = vand.u32 2147483647, %v2700_v49 }
 0x420   :  { %v827_v44 = vadd.f32 %v2024_v0, %v826_v20  ;;  %v871_v24 = vmul.f32 %v2028_v31, %v870_v47 }
 0x422   :  { %v831_v28 = vsel %vm830_vm11, %v2024_v0, %v827_v44  ;;  %v872_v25 = vadd.f32 %v2028_v31, %v871_v24  ;;  %vm878_vm11 = vcmp.eq.f32.partialorder %v877_v35, 8.507059e+37 }
 0x423   :  { %v836_v34 = vsel %vm833_vm13, %v835_v30, %v831_v28 }
 0x424   :  { %v837_v37 = vmul.f32 %v2657_v50, %v836_v34  ;;  %v857_v50 = vadd.f32 %v2026_v13, %v856_v43  ;;  %v876_v4 = vsel %vm875_vm10, %v2028_v31, %v872_v25 }
 0x425   :  { %v2732_v41 = vpop.eup %2029  ;;  %v881_v63 = vsel %vm878_vm11, %v880_v62, %v876_v4 }
 0x426   :  { %1883 = vmatmul.msk.f32.gmra.mxu3 %vm633_vm9, %v837_v37  ;;  %v766_v29 = vsel %vm633_vm9, %v2732_v41, 0.0  ;;  %v861_v48 = vsel %vm860_vm4, %v2026_v13, %v857_v50  ;;  %v882_v11 = vmul.f32 %v2634_v55, %v881_v63 }
 0x427   :  { %767 = vadd.xlane.f32.xlu0 %v766_v29  ;;  %v866_v56 = vsel %vm863_vm5, %v865_v51, %v861_v48 }
 0x428   :  { %v867_v8 = vmul.f32 %v2641_v3, %v866_v56 }
 0x42e   :  { %1884 = vmatmul.msk.f32.gmra.mxu3 %vm633_vm9, %v852_v59 }
 0x434   :  { %v753_v5 = vpop.xlane.xlu2 %752 }
 0x435   :  { %2031 = vrcp.f32 %v753_v5  ;;  %v756_v19 = vpop.xlane.xlu1 %755  ;;  %v894_v14 = vand.u32 2147483648, %v753_v5  ;;  %v892_v39 = vand.u32 2147483647, %v753_v5  ;;  %vm888_vm13 = vweird.f32 %v753_v5 }
 0x436   :  { %2033 = vrcp.f32 %v756_v19  ;;  %1885 = vmatmul.msk.f32.gmra.mxu3 %vm633_vm9, %v867_v8  ;;  %vm903_vm2 = vweird.f32 %v756_v19  ;;  %v907_v28 = vand.u32 2147483647, %v756_v19 }
 0x437   :  { %v895_v22 = vor.u32 1.1754944e-38, %v894_v14  ;;  %vm893_vm15 = vcmp.eq.f32.partialorder %v892_v39, 8.507059e+37 }
 0x438   :  { %vm908_vm4 = vcmp.eq.f32.partialorder %v907_v28, 8.507059e+37 }
 0x43b   :  { %v2032_v2 = vpop.eup %2031 }
 0x43c   :  { %v2034_v0 = vpop.eup %2033  ;;  %v884_v1 = vmul.f32 %v2032_v2, %v753_v5  ;;  %v681_v10 = vpop.xlane.xlu2 %680  ;;  %vm889_vm12 = vweird.f32 %v2032_v2 }
 0x43d   :  { %v899_v13 = vmul.f32 %v2034_v0, %v756_v19  ;;  %v697_v3 = vsub.f32 %v2681_v36, %v681_v10  ;;  %vm890_vm14 = vmor %vm888_vm13, %vm889_vm12  ;;  %vm904_vm1 = vweird.f32 %v2034_v0  ;;  %v909_v36 = vand.u32 2147483648, %v756_v19 }
 0x43e   :  { %v885_v49 = vsub.f32 1.0, %v884_v1  ;;  %1886 = vmatmul.msk.f32.gmra.mxu3 %vm633_vm9, %v882_v11  ;;  %vm905_vm3 = vmor %vm903_vm2, %vm904_vm1 }
 0x43f   :  { %v900_v15 = vsub.f32 1.0, %v899_v13  ;;  %v728_v16 = vmul.f32 1.442695, %v697_v3  ;;  %v910_v34 = vor.u32 1.1754944e-38, %v909_v36 }
 0x440   :  { %v886_v40 = vmul.f32 %v2032_v2, %v885_v49 }
 0x441   :  { %v901_v18 = vmul.f32 %v2034_v0, %v900_v15  ;;  %2035 = vpow2.f32 %v728_v16 }
 0x442   :  { %v887_v20 = vadd.f32 %v2032_v2, %v886_v40 }
 0x443   :  { %v902_v55 = vadd.f32 %v2034_v0, %v901_v18 }
 0x444   :  { %v891_v44 = vsel %vm890_vm14, %v2032_v2, %v887_v20 }
 0x445   :  { %v896_v30 = vsel %vm893_vm15, %v895_v22, %v891_v44  ;;  %v906_v27 = vsel %vm905_vm3, %v2034_v0, %v902_v55 }
 0x446   :  { %v897_v26 = vmul.f32 %v2670_v32, %v896_v30  ;;  %v911_v37 = vsel %vm908_vm4, %v910_v34, %v906_v27 }
 0x447   :  { %v2752_v17 = vpop.eup %2035  ;;  %v912_v9 = vmul.f32 %v2672_v33, %v911_v37 }
 0x448   :  { %1887 = vmatmul.msk.f32.gmra.mxu3 %vm633_vm9, %v897_v26  ;;  %v775_v31 = vsel %vm633_vm9, %v2752_v17, 0.0 }
 0x449   :  { %776 = vadd.xlane.f32.xlu0 %v775_v31 }
 0x450   :  { %1888 = vmatmul.msk.f32.gmra.mxu3 %vm633_vm9, %v912_v9 }
 0x461   :  { %v762_v42 = vpop.xlane.xlu1 %761 }
 0x462   :  { %2037 = vrcp.f32 %v762_v42  ;;  %v939_v8 = vand.u32 2147483648, %v762_v42  ;;  %vm933_vm12 = vweird.f32 %v762_v42  ;;  %v937_v4 = vand.u32 2147483647, %v762_v42 }
 0x464   :  { %v940_v2 = vor.u32 1.1754944e-38, %v939_v8  ;;  %vm938_vm14 = vcmp.eq.f32.partialorder %v937_v4, 8.507059e+37 }
 0x466   :  { %v2761_v0 = vpop.f32.mrf.mxu3 }
 0x468   :  { %v2038_v32 = vpop.eup %2037 }
 0x469   :  { %v929_v45 = vmul.f32 %v2038_v32, %v762_v42  ;;  %vm934_vm10 = vweird.f32 %v2038_v32 }
 0x46a   :  { %vm935_vm13 = vmor %vm933_vm12, %vm934_vm10 }
 0x46b   :  { %v930_v46 = vsub.f32 1.0, %v929_v45 }
 0x46d   :  { %v931_v59 = vmul.f32 %v2038_v32, %v930_v46 }
 0x46e   :  { %v2765_v16 = vpop.f32.mrf.mxu3 }
 0x46f   :  { %v932_v5 = vadd.f32 %v2038_v32, %v931_v59 }
 0x471   :  { %v765_v43 = vpop.xlane.xlu2 %764  ;;  %v936_v63 = vsel %vm935_vm13, %v2038_v32, %v932_v5 }
 0x472   :  { %v941_v1 = vsel %vm938_vm14, %v940_v2, %v936_v63  ;;  %v954_v11 = vand.u32 2147483648, %v765_v43  ;;  %vm948_vm1 = vweird.f32 %v765_v43  ;;  %v952_v3 = vand.u32 2147483647, %v765_v43 }
 0x473   :  { %v942_v13 = vmul.f32 %v2692_v38, %v941_v1 }
 0x474   :  { %v955_v14 = vor.u32 1.1754944e-38, %v954_v11  ;;  %vm953_vm3 = vcmp.eq.f32.partialorder %v952_v3, 8.507059e+37 }
 0x476   :  { %v2769_v44 = vpop.f32.mrf.mxu3 }
 0x477   :  { %v759_v29 = vpop.xlane.xlu0 %758 }
 0x478   :  { %2039 = vrcp.f32 %v759_v29  ;;  %v924_v61 = vand.u32 2147483648, %v759_v29  ;;  %v922_v33 = vand.u32 2147483647, %v759_v29  ;;  %vm918_vm6 = vweird.f32 %v759_v29 }
 0x479   :  { %2041 = vrcp.f32 %v765_v43 }
 0x47a   :  { %v925_v56 = vor.u32 1.1754944e-38, %v924_v61  ;;  %vm923_vm11 = vcmp.eq.f32.partialorder %v922_v33, 8.507059e+37 }
 0x47e   :  { %v2040_v7 = vpop.eup %2039 }
 0x47f   :  { %v914_v47 = vmul.f32 %v2040_v7, %v759_v29  ;;  %v2042_v50 = vpop.eup %2041  ;;  %vm919_vm5 = vweird.f32 %v2040_v7 }
 0x480   :  { %v944_v24 = vmul.f32 %v2042_v50, %v765_v43  ;;  %vm920_vm7 = vmor %vm918_vm6, %vm919_vm5  ;;  %vm949_vm15 = vweird.f32 %v2042_v50 }
 0x481   :  { %v915_v12 = vsub.f32 1.0, %v914_v47  ;;  %vm950_vm2 = vmor %vm948_vm1, %vm949_vm15  ;;  %v774_v40 = vpop.xlane.xlu2 %773 }
 0x482   :  { %v945_v25 = vsub.f32 1.0, %v944_v24  ;;  %v999_v33 = vand.u32 2147483648, %v774_v40  ;;  %vm993_vm15 = vweird.f32 %v774_v40 }
 0x483   :  { %v916_v48 = vmul.f32 %v2040_v7, %v915_v12 }
 0x484   :  { %v946_v62 = vmul.f32 %v2042_v50, %v945_v25  ;;  %v1000_v25 = vor.u32 1.1754944e-38, %v999_v33 }
 0x485   :  { %v917_v51 = vadd.f32 %v2040_v7, %v916_v48 }
 0x486   :  { %v947_v10 = vadd.f32 %v2042_v50, %v946_v62 }
 0x487   :  { %v921_v23 = vsel %vm920_vm7, %v2040_v7, %v917_v51  ;;  %v771_v49 = vpop.xlane.xlu1 %770 }
 0x488   :  { %v926_v35 = vsel %vm923_vm11, %v925_v56, %v921_v23  ;;  %2043 = vrcp.f32 %v771_v49  ;;  %v984_v45 = vand.u32 2147483648, %v771_v49  ;;  %vm978_vm11 = vweird.f32 %v771_v49 }
 0x489   :  { %v927_v19 = vmul.f32 %v2708_v53, %v926_v35  ;;  %v951_v53 = vsel %vm950_vm2, %v2042_v50, %v947_v10  ;;  %v982_v47 = vand.u32 2147483647, %v771_v49 }
 0x48a   :  { %v956_v15 = vsel %vm953_vm3, %v955_v14, %v951_v53  ;;  %v985_v59 = vor.u32 1.1754944e-38, %v984_v45 }
 0x48b   :  { %1889 = vmatmul.msk.f32.gmra.mxu3 %vm633_vm9, %v927_v19  ;;  %v957_v39 = vmul.f32 %v2702_v60, %v956_v15  ;;  %vm983_vm13 = vcmp.eq.f32.partialorder %v982_v47, 8.507059e+37 }
 0x48e   :  { %v2044_v20 = vpop.eup %2043 }
 0x48f   :  { %v974_v38 = vmul.f32 %v2044_v20, %v771_v49  ;;  %vm979_vm10 = vweird.f32 %v2044_v20 }
 0x490   :  { %vm980_vm12 = vmor %vm978_vm11, %vm979_vm10  ;;  %vm1212_vm10 = vcmask 195584   ;;  %vm1274_vm11 = vcmask 1041408  }
 0x491   :  { %v975_v36 = vsub.f32 1.0, %v974_v38 }
 0x493   :  { %1890 = vmatmul.msk.f32.gmra.mxu3 %vm633_vm9, %v942_v13  ;;  %v976_v27 = vmul.f32 %v2044_v20, %v975_v36  ;;  %v1217_v36 = vld [vmem:[%s3274_s10] sm:$0xff] }
 0x495   :  { %v977_v29 = vadd.f32 %v2044_v20, %v976_v27 }
 0x497   :  { %v981_v12 = vsel %vm980_vm12, %v2044_v20, %v977_v29  ;;  %vm1305_vm12 = vcmask 1044480  }
 0x498   :  { %v986_v24 = vsel %vm983_vm13, %v985_v59, %v981_v12  ;;  %vm1285_vm13 = vcmask 1046528  }
 0x499   :  { %v987_v51 = vmul.f32 %v2719_v58, %v986_v24 }
 0x49a   :  { %v768_v18 = vpop.xlane.xlu0 %767 }
 0x49b   :  { %2045 = vrcp.f32 %v768_v18  ;;  %1891 = vmatmul.msk.f32.gmra.mxu3 %vm633_vm9, %v957_v39  ;;  %v969_v31 = vand.u32 2147483648, %v768_v18  ;;  %v967_v60 = vand.u32 2147483647, %v768_v18  ;;  %vm963_vm5 = vweird.f32 %v768_v18 }
 0x49c   :  { %2047 = vrcp.f32 %v774_v40 }
 0x49d   :  { %v970_v42 = vor.u32 1.1754944e-38, %v969_v31  ;;  %vm968_vm7 = vcmp.eq.f32.partialorder %v967_v60, 8.507059e+37 }
 0x4a1   :  { %v2046_v22 = vpop.eup %2045 }
 0x4a2   :  { %v2048_v55 = vpop.eup %2047  ;;  %v959_v30 = vmul.f32 %v2046_v22, %v768_v18  ;;  %vm964_vm4 = vweird.f32 %v2046_v22 }
 0x4a3   :  { %v989_v28 = vmul.f32 %v2048_v55, %v774_v40  ;;  %vm965_vm6 = vmor %vm963_vm5, %vm964_vm4  ;;  %vm994_vm14 = vweird.f32 %v2048_v55 }
 0x4a4   :  { %v960_v26 = vsub.f32 1.0, %v959_v30  ;;  %vm995_vm1 = vmor %vm993_vm15, %vm994_vm14  ;;  %vm1297_vm14 = vcmask 1045504   ;;  %vm1317_vm15 = vcmask 1043456  }
 0x4a5   :  { %v990_v9 = vsub.f32 1.0, %v989_v28 }
 0x4a6   :  { %v961_v34 = vmul.f32 %v2046_v22, %v960_v26 }
 0x4a7   :  { %v991_v50 = vmul.f32 %v2048_v55, %v990_v9 }
 0x4a8   :  { %v962_v37 = vadd.f32 %v2046_v22, %v961_v34 }
 0x4a9   :  { %v2771_v32 = vpop.f32.mrf.mxu3  ;;  %v992_v48 = vadd.f32 %v2048_v55, %v991_v50 }
 0x4aa   :  { %v966_v43 = vsel %vm965_vm6, %v2046_v22, %v962_v37  ;;  %v1219_v22 = vld [vmem:[%s3274_s10 + $0x10] sm:$0xff] }
 0x4ab   :  { %v971_v7 = vsel %vm968_vm7, %v970_v42, %v966_v43  ;;  %v996_v56 = vsel %vm995_vm1, %v2048_v55, %v992_v48  ;;  %v1218_v55 = vld [vmem:[%s3274_s10 + $0x8] sm:$0xff]  ;;  %vm1207_vm7 = vcmask 130048  }
 0x4ac   :  { %v972_v46 = vmul.f32 %v2732_v41, %v971_v7  ;;  %v997_v41 = vand.u32 2147483647, %v774_v40 }
 0x4ae   :  { %1892 = vmatmul.msk.f32.gmra.mxu3 %vm633_vm9, %v972_v46  ;;  %vm998_vm2 = vcmp.eq.f32.partialorder %v997_v41, 8.507059e+37 }
 0x4af   :  { %v1001_v5 = vsel %vm998_vm2, %v1000_v25, %v996_v56 }
 0x4b0   :  { %v1002_v35 = vmul.f32 %v2715_v6, %v1001_v5  ;;  %v1358_v5 = vld [vmem:[%s3276_s12 + $0xf8] sm:$0xff] }
 0x4b1   :  { %v1119_v61 = vpop.f32.mrf.mxu3 }
 0x4b2   :  { %1159 = vrot.lane.b32.xlu1 %v1119_v61, %s2082_s11 }
 0x4b6   :  { %1893 = vmatmul.msk.f32.gmra.mxu3 %vm633_vm9, %v987_v51 }
 0x4b9   :  { %v1122_v23 = vpop.f32.mrf.mxu3 }
 0x4ba   :  { %1161 = vrot.lane.b32.xlu1 %v1122_v23, %s2082_s11  ;;  %v1341_v23 = vld [vmem:[%s3276_s12 + $0x70] sm:$0xff] }
 0x4bc   :  { %v777_v8 = vpop.xlane.xlu0 %776 }
 0x4bd   :  { %2049 = vrcp.f32 %v777_v8  ;;  %v1014_v63 = vand.u32 2147483648, %v777_v8  ;;  %v1012_v1 = vand.u32 2147483647, %v777_v8  ;;  %vm1008_vm4 = vweird.f32 %v777_v8 }
 0x4be   :  { %1894 = vmatmul.msk.f32.gmra.mxu3 %vm633_vm9, %v1002_v35  ;;  %v1338_v35 = vld [vmem:[%s3276_s12 + $0x58] sm:$0xff] }
 0x4bf   :  { %v1015_v11 = vor.u32 1.1754944e-38, %v1014_v63  ;;  %vm1013_vm6 = vcmp.eq.f32.partialorder %v1012_v1, 8.507059e+37 }
 0x4c1   :  { %v1125_v19 = vpop.f32.mrf.mxu3 }
 0x4c2   :  { %1163 = vrot.lane.b32.xlu1 %v1125_v19, %s2082_s11  ;;  %v1356_v19 = vld [vmem:[%s3276_s12 + $0xe8] sm:$0xff] }
 0x4c3   :  { %v2050_v58 = vpop.eup %2049 }
 0x4c4   :  { %v1004_v4 = vmul.f32 %v2050_v58, %v777_v8  ;;  %vm1009_vm3 = vweird.f32 %v2050_v58  ;;  %v1357_v8 = vld [vmem:[%s3276_s12 + $0xf0] sm:$0xff] }
 0x4c5   :  { %vm1010_vm5 = vmor %vm1008_vm4, %vm1009_vm3  ;;  %vm1718_vm3 = vcmask 1040384  }
 0x4c6   :  { %v1005_v62 = vsub.f32 1.0, %v1004_v4 }
 0x4c8   :  { %v1006_v2 = vmul.f32 %v2050_v58, %v1005_v62  ;;  %v1337_v62 = vld [vmem:[%s3276_s12 + $0x50] sm:$0xff] }
 0x4ca   :  { %v1007_v10 = vadd.f32 %v2050_v58, %v1006_v2  ;;  %v1336_v2 = vld [vmem:[%s3276_s12 + $0x48] sm:$0xff] }
 0x4cb   :  { %v1128_v13 = vpop.f32.mrf.mxu3 }
 0x4cc   :  { %1165 = vrot.lane.b32.xlu1 %v1128_v13, %s2082_s11  ;;  %v1011_v6 = vsel %vm1010_vm5, %v2050_v58, %v1007_v10 }
 0x4cd   :  { %v1016_v3 = vsel %vm1013_vm6, %v1015_v11, %v1011_v6  ;;  %v1334_v11 = vld [vmem:[%s3276_s12 + $0x38] sm:$0xff] }
 0x4ce   :  { %v1017_v49 = vmul.f32 %v2752_v17, %v1016_v3  ;;  %v1220_v17 = vld [vmem:[%s3274_s10 + $0x18] sm:$0xff]  ;;  %s2085_s10 = smov 32  }
 0x4cf   :  { %1245 = vmatpush.msrb.mxu1 %v1220_v17  ;;  %v1331_v17 = vld [vmem:[%s3276_s12 + $0x20] sm:$0xff] }
 0x4d0   :  { %1895 = vmatmul.msk.f32.gmra.mxu3 %vm633_vm9, %v1017_v49  ;;  %v1333_v49 = vld [vmem:[%s3276_s12 + $0x30] sm:$0xff] }
 0x4d1   :  { %1246 = vmatpush.msrb.mxu1 %v1219_v22 }
 0x4d3   :  { %v1131_v53 = vpop.f32.mrf.mxu3  ;;  %1247 = vmatpush.msrb.mxu1 %v1218_v55 }
 0x4d4   :  { %1175 = vrot.lane.b32.xlu2 %v1131_v53, %s2083_s30 }
 0x4d5   :  { %1248 = vmatpush.msrb.mxu1 %v1217_v36 }
 0x4d7   :  { %1398 = vmatpush.msra.mxu1 %v1358_v5 }
 0x4d9   :  { %1399 = vmatpush.msra.mxu1 %v1357_v8 }
 0x4db   :  { %1400 = vmatpush.msra.mxu1 %v1356_v19 }
 0x50e   :  { %v1134_v14 = vpop.f32.mrf.mxu3 }
 0x516   :  { %v1137_v15 = vpop.f32.mrf.mxu3 }
 0x51e   :  { %v1140_v40 = vpop.f32.mrf.mxu3 }
 0x524   :  { %v1160_v30 = vpop.permute.xlu1 %1159 }
 0x525   :  { %v1203_v28 = vsel %vm471_vm8, %v2761_v0, %v1160_v30  ;;  %v1330_v30 = vld [vmem:[%s3276_s12 + $0x18] sm:$0xff] }
 0x52c   :  { %v1162_v60 = vpop.permute.xlu1 %1161 }
 0x52d   :  { %v1204_v9 = vsel %vm471_vm8, %v2765_v16, %v1162_v60  ;;  %v1355_v60 = vld [vmem:[%s3276_s12 + $0xe0] sm:$0xff] }
 0x52e   :  { %v1176_v26 = vpop.permute.xlu2 %1175  ;;  %1401 = vmatpush.msra.mxu1 %v1355_v60  ;;  %v1564_v60 = vld [vmem:[%s3278_s14 + $0xf8] sm:$0xff] }
 0x52f   :  { %v1208_v31 = vsel %vm1207_vm7, %v1203_v28, %v1176_v26  ;;  %v1329_v26 = vld [vmem:[%s3276_s12 + $0x10] sm:$0xff] }
 0x531   :  { %v1143_v39 = vpop.f32.mrf.mxu3 }
 0x532   :  { %1191 = vrot.lane.b32.xlu0 %v1143_v39, %s2084_s29 }
 0x534   :  { %v1164_v0 = vpop.permute.xlu1 %1163 }
 0x535   :  { %v1205_v45 = vsel %vm471_vm8, %v2769_v44, %v1164_v0  ;;  %v1349_v0 = vld [vmem:[%s3276_s12 + $0xb0] sm:$0xff] }
 0x539   :  { %v1146_v18 = vpop.f32.mrf.mxu3 }
 0x53a   :  { %1177 = vrot.lane.b32.xlu0 %v1134_v14, %s2083_s30  ;;  %1193 = vrot.lane.b32.xlu2 %v1146_v18, %s2084_s29 }
 0x53e   :  { %v1166_v16 = vpop.permute.xlu1 %1165 }
 0x53f   :  { %v1206_v12 = vsel %vm471_vm8, %v2771_v32, %v1166_v16  ;;  %v1342_v32 = vld [vmem:[%s3276_s12 + $0x78] sm:$0xff] }
 0x540   :  { %1375 = vmatpush.msrb.mxu0 %v1342_v32  ;;  %v1346_v16 = vld [vmem:[%s3276_s12 + $0x98] sm:$0xff] }
 0x541   :  { %v1149_v20 = vpop.f32.mrf.mxu3 }
 0x542   :  { %1179 = vrot.lane.b32.xlu0 %v1137_v15, %s2083_s30  ;;  %1195 = vrot.lane.b32.xlu2 %v1149_v20, %s2084_s29 }
 0x543   :  { %1376 = vmatpush.msrb.mxu0 %v1341_v23 }
 0x54a   :  { %1181 = vrot.lane.b32.xlu0 %v1140_v40, %s2083_s30 }
 0x553   :  { %v1152_v38 = vpop.f32.mrf.mxu3 }
 0x554   :  { %1197 = vrot.lane.b32.xlu2 %v1152_v38, %s2084_s29 }
 0x594   :  { %v1194_v37 = vpop.permute.xlu2 %1193 }
 0x59c   :  { %v1196_v46 = vpop.permute.xlu2 %1195 }
 0x5a4   :  { %v1192_v27 = vpop.permute.xlu0 %1191 }
 0x5a5   :  { %v1213_v34 = vsel %vm1212_vm10, %v1208_v31, %v1192_v27  ;;  %v1328_v31 = vld [vmem:[%s3276_s12 + $0x8] sm:$0xff] }
 0x5a6   :  { %1896 = vmatmul.msk.f32.vlgmr.msrb.gmra.mxu1 %vm81_vm0, %v1213_v34  ;;  %v1327_v34 = vld [vmem:[%s3276_s12] sm:$0xff] }
 0x5ac   :  { %v1178_v42 = vpop.permute.xlu0 %1177 }
 0x5ad   :  { %v1209_v43 = vsel %vm1207_vm7, %v1204_v9, %v1178_v42  ;;  %v1353_v9 = vld [vmem:[%s3276_s12 + $0xd0] sm:$0xff]  ;;  %v1352_v42 = vld [vmem:[%s3276_s12 + $0xc8] sm:$0xff] }
 0x5ae   :  { %v1214_v29 = vsel %vm1212_vm10, %v1209_v43, %v1194_v37  ;;  %v1198_v61 = vpop.permute.xlu2 %1197  ;;  %v1354_v37 = vld [vmem:[%s3276_s12 + $0xd8] sm:$0xff]  ;;  %v1351_v43 = vld [vmem:[%s3276_s12 + $0xc0] sm:$0xff] }
 0x5af   :  { %1897 = vmatmul.msk.f32.gmra.mxu1 %vm81_vm0, %v1214_v29  ;;  %v1350_v29 = vld [vmem:[%s3276_s12 + $0xb8] sm:$0xff] }
 0x5b0   :  { %1402 = vmatpush.msra.mxu1 %v1354_v37  ;;  %v1546_v37 = vld [vmem:[%s3278_s14 + $0x68] sm:$0xff] }
 0x5b2   :  { %1403 = vmatpush.msra.mxu1 %v1353_v9  ;;  %v1563_v9 = vld [vmem:[%s3278_s14 + $0xf0] sm:$0xff] }
 0x5b4   :  { %v1180_v7 = vpop.permute.xlu0 %1179  ;;  %1404 = vmatpush.msra.mxu1 %v1352_v42  ;;  %v1562_v42 = vld [vmem:[%s3278_s14 + $0xe8] sm:$0xff] }
 0x5b5   :  { %v1210_v47 = vsel %vm1207_vm7, %v1205_v45, %v1180_v7  ;;  %v1366_v45 = vld [vmem:[%s3276_s12 + $0x138] sm:$0xff]  ;;  %v1365_v7 = vld [vmem:[%s3276_s12 + $0x130] sm:$0xff] }
 0x5b6   :  { %v1215_v50 = vsel %vm1212_vm10, %v1210_v47, %v1196_v46  ;;  %1405 = vmatpush.msra.mxu1 %v1351_v43  ;;  %v1348_v46 = vld [vmem:[%s3276_s12 + $0xa8] sm:$0xff]  ;;  %v1545_v43 = vld [vmem:[%s3278_s14 + $0x60] sm:$0xff] }
 0x5b7   :  { %1898 = vmatmul.msk.f32.gmra.mxu1 %vm81_vm0, %v1215_v50  ;;  %v1364_v47 = vld [vmem:[%s3276_s12 + $0x128] sm:$0xff]  ;;  %v1347_v50 = vld [vmem:[%s3276_s12 + $0xa0] sm:$0xff] }
 0x5b8   :  { %1406 = vmatpush.msra.mxu1 %v1350_v29  ;;  %v1561_v29 = vld [vmem:[%s3278_s14 + $0xe0] sm:$0xff] }
 0x5ba   :  { %1407 = vmatpush.msra.mxu1 %v1349_v0  ;;  %v1544_v0 = vld [vmem:[%s3278_s14 + $0x58] sm:$0xff] }
 0x5bc   :  { %v1182_v59 = vpop.permute.xlu0 %1181  ;;  %1408 = vmatpush.msra.mxu1 %v1348_v46  ;;  %v1559_v46 = vld [vmem:[%s3278_s14 + $0xd0] sm:$0xff] }
 0x5bd   :  { %v1211_v24 = vsel %vm1207_vm7, %v1206_v12, %v1182_v59  ;;  %v1345_v12 = vld [vmem:[%s3276_s12 + $0x90] sm:$0xff]  ;;  %v1344_v59 = vld [vmem:[%s3276_s12 + $0x88] sm:$0xff] }
 0x5be   :  { %v1216_v48 = vsel %vm1212_vm10, %v1211_v24, %v1198_v61  ;;  %1409 = vmatpush.msra.mxu1 %v1347_v50  ;;  %v1343_v61 = vld [vmem:[%s3276_s12 + $0x80] sm:$0xff]  ;;  %v1558_v50 = vld [vmem:[%s3278_s14 + $0xc8] sm:$0xff] }
 0x5bf   :  { %1899 = vmatmul.msk.f32.gmra.mxu1 %vm81_vm0, %v1216_v48  ;;  %v1363_v24 = vld [vmem:[%s3276_s12 + $0x120] sm:$0xff]  ;;  %v1362_v48 = vld [vmem:[%s3276_s12 + $0x118] sm:$0xff] }
 0x5c0   :  { %1410 = vmatpush.msra.mxu1 %v1346_v16  ;;  %v1541_v16 = vld [vmem:[%s3278_s14 + $0x40] sm:$0xff] }
 0x5c2   :  { %1411 = vmatpush.msra.mxu1 %v1345_v12  ;;  %v1557_v12 = vld [vmem:[%s3278_s14 + $0xc0] sm:$0xff] }
 0x5c4   :  { %1412 = vmatpush.msra.mxu1 %v1344_v59 }
 0x5c6   :  { %1413 = vmatpush.msra.mxu1 %v1343_v61  ;;  %v1540_v61 = vld [vmem:[%s3278_s14 + $0x38] sm:$0xff] }
 0x623   :  { %v1250_v44 = vpop.f32.mrf.mxu1 }
 0x624   :  { %v1251_v58 = vadd.f32 %v1250_v44, %v2396_v54  ;;  %v1335_v54 = vld [vmem:[%s3276_s12 + $0x40] sm:$0xff]  ;;  %v1361_v44 = vld [vmem:[%s3276_s12 + $0x110] sm:$0xff] }
 0x62c   :  { %v1253_v33 = vpop.f32.mrf.mxu1 }
 0x62d   :  { %v1254_v10 = vadd.f32 %v1253_v33, %v2423_v52  ;;  %v1332_v52 = vld [vmem:[%s3276_s12 + $0x28] sm:$0xff] }
 0x62e   :  { %v1360_v33 = vld [vmem:[%s3276_s12 + $0x108] sm:$0xff] }
 0x634   :  { %v1256_v51 = vpop.f32.mrf.mxu1 }
 0x635   :  { %v1257_v41 = vadd.f32 %v1256_v51, %v2431_v21  ;;  %v1340_v21 = vld [vmem:[%s3276_s12 + $0x68] sm:$0xff]  ;;  %v1359_v51 = vld [vmem:[%s3276_s12 + $0x100] sm:$0xff] }
 0x636   :  { %1377 = vmatpush.msrb.mxu0 %v1340_v21 }
 0x637   :  { %1264 = vrot.lane.b32.xlu1 %v1257_v41, %s2085_s10 }
 0x63c   :  { %v1259_v56 = vpop.f32.mrf.mxu1 }
 0x63d   :  { %v1260_v25 = vadd.f32 %v1259_v56, %v2451_v57  ;;  %v1339_v57 = vld [vmem:[%s3276_s12 + $0x60] sm:$0xff] }
 0x63e   :  { %1378 = vmatpush.msrb.mxu0 %v1339_v57 }
 0x63f   :  { %1266 = vrot.lane.b32.xlu0 %v1260_v25, %s2085_s10 }
 0x640   :  { %1379 = vmatpush.msrb.mxu0 %v1338_v35 }
 0x642   :  { %1380 = vmatpush.msrb.mxu0 %v1337_v62 }
 0x644   :  { %1381 = vmatpush.msrb.mxu0 %v1336_v2 }
 0x646   :  { %1382 = vmatpush.msrb.mxu0 %v1335_v54 }
 0x648   :  { %1383 = vmatpush.msrb.mxu0 %v1334_v11 }
 0x64a   :  { %1384 = vmatpush.msrb.mxu0 %v1333_v49  ;;  %v1956_v49 = vld [vmem:[%s3277_s13] ss:$0 sm:$0xff] }
 0x64c   :  { %1385 = vmatpush.msrb.mxu0 %v1332_v52 }
 0x64e   :  { %1386 = vmatpush.msrb.mxu0 %v1331_v17 }
 0x650   :  { %1387 = vmatpush.msrb.mxu0 %v1330_v30  ;;  %v2087_v30 = vmov 0.0  }
 0x652   :  { %1388 = vmatpush.msrb.mxu0 %v1329_v26 }
 0x654   :  { %1389 = vmatpush.msrb.mxu0 %v1328_v31 }
 0x656   :  { %1390 = vmatpush.msrb.mxu0 %v1327_v34  ;;  %v1547_v34 = vld [vmem:[%s3278_s14 + $0x70] sm:$0xff] }
 0x658   :  { %1429 = vmatpush.msra.mxu0 %v1366_v45  ;;  %v1560_v45 = vld [vmem:[%s3278_s14 + $0xd8] sm:$0xff] }
 0x65a   :  { %1430 = vmatpush.msra.mxu0 %v1365_v7  ;;  %v1543_v7 = vld [vmem:[%s3278_s14 + $0x50] sm:$0xff] }
 0x65c   :  { %1431 = vmatpush.msra.mxu0 %v1364_v47  ;;  %v1542_v47 = vld [vmem:[%s3278_s14 + $0x48] sm:$0xff] }
 0x65e   :  { %1432 = vmatpush.msra.mxu0 %v1363_v24  ;;  %v1556_v24 = vld [vmem:[%s3278_s14 + $0xb8] sm:$0xff] }
 0x660   :  { %1433 = vmatpush.msra.mxu0 %v1362_v48  ;;  %v1539_v48 = vld [vmem:[%s3278_s14 + $0x30] sm:$0xff] }
 0x662   :  { %1434 = vmatpush.msra.mxu0 %v1361_v44  ;;  %v1555_v44 = vld [vmem:[%s3278_s14 + $0xb0] sm:$0xff] }
 0x664   :  { %1435 = vmatpush.msra.mxu0 %v1360_v33  ;;  %v1538_v33 = vld [vmem:[%s3278_s14 + $0x28] sm:$0xff] }
 0x666   :  { %1436 = vmatpush.msra.mxu0 %v1359_v51  ;;  %v1554_v51 = vld [vmem:[%s3278_s14 + $0xa8] sm:$0xff] }
 0x6a9   :  { %v1265_v4 = vpop.permute.xlu1 %1264 }
 0x6aa   :  { %v1270_v63 = vsel %vm81_vm0, %v1251_v58, %v1265_v4 }
 0x6ab   :  { %v1275_v1 = vrot.slane %v1270_v63, 6 }
 0x6ad   :  { %v2861_v6 = vsel %vm1274_vm11, 0.0, %v1275_v1 }
 0x6ae   :  { %v1306_v40 = vrot.slane %v2861_v6, 3  ;;  %v1286_v38 = vrot.slane %v2861_v6, 1  ;;  %v1298_v32 = vrot.slane %v2861_v6, 2  ;;  %v1318_v4 = vrot.slane %v2861_v6, 4 }
 0x6b1   :  { %v1267_v13 = vpop.permute.xlu0 %1266 }
 0x6b2   :  { %v1271_v3 = vsel %vm81_vm0, %v1254_v10, %v1267_v13 }
 0x6b3   :  { %v1276_v53 = vrot.slane %v1271_v3, 6  ;;  %v1446_v3 = vlaneseq }
 0x6b5   :  { %v2871_v14 = vsel %vm1274_vm11, %v1275_v1, %v1276_v53  ;;  %v2874_v15 = vsel %vm1274_vm11, %v1276_v53, 0.0  ;;  %v1447_v53 = vshrl.u32 %v1446_v3, 7 }
 0x6b6   :  { %v1307_v39 = vrot.slane %v2871_v14, 3  ;;  %v1287_v18 = vrot.slane %v2871_v14, 1  ;;  %v1289_v20 = vrot.slane %v2874_v15, 1  ;;  %v1309_v28 = vrot.slane %v2874_v15, 3 }
 0x6b7   :  { %v1299_v25 = vrot.slane %v2871_v14, 2  ;;  %v1301_v35 = vrot.slane %v2874_v15, 2  ;;  %v1319_v19 = vrot.slane %v2871_v14, 4  ;;  %v1321_v1 = vrot.slane %v2874_v15, 4 }
 0x6b8   :  { %v1308_v22 = vsel %vm1305_vm12, %v1306_v40, %v1307_v39  ;;  %v1290_v55 = vsel %vm1285_vm13, %v1287_v18, %v1289_v20  ;;  %v1288_v36 = vsel %vm1285_vm13, %v1286_v38, %v1287_v18  ;;  %v1310_v27 = vsel %vm1305_vm12, %v1307_v39, %v1309_v28 }
 0x6b9   :  { %1311 = vrot.lane.b32.xlu0 %v1308_v22, %s2086_s1  ;;  %1293 = vrot.lane.b32.xlu1 %v1290_v55, %s2086_s1  ;;  %v1300_v21 = vsel %vm1297_vm14, %v1298_v32, %v1299_v25  ;;  %v1302_v62 = vsel %vm1297_vm14, %v1299_v25, %v1301_v35  ;;  %v1320_v2 = vsel %vm1317_vm15, %v1318_v4, %v1319_v19  ;;  %v1449_v39 = vand.u32 127, %v1446_v3  ;;  %v1536_v32 = vld [vmem:[%s3278_s14 + $0x18] sm:$0xff]  ;;  %v1534_v35 = vld [vmem:[%s3278_s14 + $0x8] sm:$0xff] }
 0x6ba   :  { %1291 = vrot.lane.b32.xlu2 %v1288_v36, %s2086_s1  ;;  %v1322_v54 = vsel %vm1317_vm15, %v1319_v19, %v1321_v1  ;;  %v1450_v18 = vmul.u32 2, %v1447_v53  ;;  %v1550_v4 = vld [vmem:[%s3278_s14 + $0x88] sm:$0xff]  ;;  %v1571_v3 = vld [vmem:[%s3278_s14 + $0x130] sm:$0xff]  ;;  %v1569_v53 = vld [vmem:[%s3278_s14 + $0x120] sm:$0xff] }
 0x6bc   :  { %vm1451_vm1 = vcmp.eq.s32.totalorder %v1449_v39, %v1450_v18  ;;  %v1454_v28 = vadd.s32 1, %v1450_v18 }
 0x6bd   :  { %v2989_v26 = vsel %vm1451_vm1, 1.0, %v2087_v30 }
 0x6be   :  { %vm1455_vm2 = vcmp.eq.s32.totalorder %v1449_v39, %v1454_v28  ;;  %v1565_v39 = vld [vmem:[%s3278_s14 + $0x100] sm:$0xff] }
 0x6bf   :  { %v2993_v31 = vsel %vm1455_vm2, 1.0, %v2087_v30 }
 0x6c2   :  { %1313 = vrot.lane.b32.xlu2 %v1310_v27, %s2086_s1  ;;  %v1548_v27 = vld [vmem:[%s3278_s14 + $0x78] sm:$0xff] }
 0x714   :  { %v1292_v41 = vpop.permute.xlu2 %1291 }
 0x715   :  { %v1323_v56 = vsel %vm633_vm9, %v2861_v6, %v1292_v41  ;;  %v1537_v41 = vld [vmem:[%s3278_s14 + $0x20] sm:$0xff] }
 0x716   :  { %1391 = vmatmul.f32.vlgmr.msrb.gmra.mxu0 %v1323_v56  ;;  %v1553_v56 = vld [vmem:[%s3278_s14 + $0xa0] sm:$0xff] }
 0x717   :  { %1579 = vmatpush.msrb.mxu0 %v1548_v27  ;;  %v1957_v27 = vld [vmem:[%s3279_s15] ss:$0 sm:$0xff] }
 0x719   :  { %1580 = vmatpush.msrb.mxu0 %v1547_v34 }
 0x71b   :  { %1581 = vmatpush.msrb.mxu0 %v1546_v37 }
 0x71c   :  { %v1314_v58 = vpop.permute.xlu2 %1313 }
 0x71d   :  { %v1326_v63 = vsel %vm633_vm9, %v1302_v62, %v1314_v58  ;;  %1582 = vmatpush.msrb.mxu0 %v1545_v43 }
 0x71f   :  { %1583 = vmatpush.msrb.mxu0 %v1544_v0  ;;  %v1735_v0 = vld [vmem:[%s3280_s16 + $0x78] sm:$0xff] }
 0x720   :  { %1740 = vmatpush.msrb.mxu3 %v1735_v0  ;;  %v1959_v0 = vld [vmem:[%s3283_s19] ss:$0 sm:$0xff] }
 0x721   :  { %1584 = vmatpush.msrb.mxu0 %v1543_v7  ;;  %v1733_v7 = vld [vmem:[%s3280_s16 + $0x68] sm:$0xff] }
 0x723   :  { %1585 = vmatpush.msrb.mxu0 %v1542_v47  ;;  %v1729_v47 = vld [vmem:[%s3280_s16 + $0x48] sm:$0xff] }
 0x725   :  { %1586 = vmatpush.msrb.mxu0 %v1541_v16 }
 0x727   :  { %1587 = vmatpush.msrb.mxu0 %v1540_v61 }
 0x729   :  { %1588 = vmatpush.msrb.mxu0 %v1539_v48 }
 0x72b   :  { %v1312_v23 = vpop.permute.xlu0 %1311  ;;  %v1294_v57 = vpop.permute.xlu1 %1293  ;;  %1589 = vmatpush.msrb.mxu0 %v1538_v33 }
 0x72c   :  { %v1325_v5 = vsel %vm633_vm9, %v1300_v21, %v1312_v23  ;;  %v1324_v8 = vsel %vm633_vm9, %v2871_v14, %v1294_v57  ;;  %v1552_v21 = vld [vmem:[%s3278_s14 + $0x98] sm:$0xff]  ;;  %v1535_v57 = vld [vmem:[%s3278_s14 + $0x10] sm:$0xff] }
 0x72d   :  { %1394 = vmatmul.f32.gmra.mxu0 %v1324_v8  ;;  %1414 = vmatmul.f32.vlgmr.msra.gmra.mxu1 %v1325_v5  ;;  %v1551_v8 = vld [vmem:[%s3278_s14 + $0x90] sm:$0xff] }
 0x72e   :  { %1590 = vmatpush.msrb.mxu0 %v1537_v41 }
 0x730   :  { %1591 = vmatpush.msrb.mxu0 %v1536_v32  ;;  %v1723_v32 = vld [vmem:[%s3280_s16 + $0x18] sm:$0xff] }
 0x732   :  { %1592 = vmatpush.msrb.mxu0 %v1535_v57  ;;  %v1720_v57 = vld [vmem:[%s3280_s16] sm:$0xff] }
 0x734   :  { %1593 = vmatpush.msrb.mxu0 %v1534_v35  ;;  %v1774_v35 = vld [vmem:[%s3282_s18 + $0x68] sm:$0xff] }
 0x735   :  { %1417 = vmatmul.f32.gmra.mxu1 %v1326_v63  ;;  %1900 = vmatmul.msk.f32.vlgmr.msra.gmra.mxu0 %vm633_vm9, %v1320_v2  ;;  %v1533_v63 = vld [vmem:[%s3278_s14] sm:$0xff] }
 0x736   :  { %1594 = vmatpush.msrb.mxu0 %v1533_v63  ;;  %v1769_v63 = vld [vmem:[%s3282_s18 + $0x40] sm:$0xff] }
 0x73d   :  { %1901 = vmatmul.msk.f32.gmra.mxu0 %vm633_vm9, %v1322_v54 }
 0x793   :  { %v1392_v10 = vpop.f32.mrf.mxu0 }
 0x794   :  { %v1393_v14 = vadd.f32 %v1956_v49, %v1392_v10  ;;  %v1572_v10 = vld [vmem:[%s3278_s14 + $0x138] sm:$0xff] }
 0x795   :  { %1627 = vmatpush.msra.mxu0 %v1572_v10  ;;  %v1766_v10 = vld [vmem:[%s3282_s18 + $0x28] sm:$0xff] }
 0x797   :  { %1628 = vmatpush.msra.mxu0 %v1571_v3 }
 0x7aa   :  { %v1395_v11 = vpop.f32.mrf.mxu0  ;;  %v1415_v13 = vpop.f32.mrf.mxu1 }
 0x7ab   :  { %v1396_v40 = vadd.f32 %v1956_v49, %v1395_v11  ;;  %v1416_v15 = vadd.f32 %v1415_v13, %v1393_v14  ;;  %v1549_v49 = vld [vmem:[%s3278_s14 + $0x80] sm:$0xff]  ;;  %v1567_v14 = vld [vmem:[%s3278_s14 + $0x110] sm:$0xff] }
 0x7b2   :  { %v1438_v6 = vpop.f32.mrf.mxu0  ;;  %v1418_v52 = vpop.f32.mrf.mxu1 }
 0x7b3   :  { %v1419_v20 = vadd.f32 %v1418_v52, %v1396_v40  ;;  %v1439_v17 = vadd.f32 %v1438_v6, %v1416_v15  ;;  %v1570_v6 = vld [vmem:[%s3278_s14 + $0x128] sm:$0xff]  ;;  %v1568_v52 = vld [vmem:[%s3278_s14 + $0x118] sm:$0xff] }
 0x7b4   :  { %1629 = vmatpush.msra.mxu0 %v1570_v6  ;;  %v1566_v40 = vld [vmem:[%s3278_s14 + $0x108] sm:$0xff] }
 0x7b5   :  { %v1444_v36 = vmax.f32 %v1439_v17, 0.0 }
 0x7b6   :  { %1630 = vmatpush.msra.mxu0 %v1569_v53 }
 0x7b8   :  { %1631 = vmatpush.msra.mxu0 %v1568_v52 }
 0x7ba   :  { %v1441_v38 = vpop.f32.mrf.mxu0  ;;  %1632 = vmatpush.msra.mxu0 %v1567_v14 }
 0x7bb   :  { %v1442_v22 = vadd.f32 %v1441_v38, %v1419_v20 }
 0x7bc   :  { %1633 = vmatpush.msra.mxu0 %v1566_v40 }
 0x7bd   :  { %v1445_v55 = vmax.f32 %v1442_v22, 0.0 }
 0x7be   :  { %1634 = vmatpush.msra.mxu0 %v1565_v39 }
 0x7bf   :  { %1475 = vmatpush.msrb.mxu1 %v1445_v55 }
 0x7c1   :  { %1476 = vmatpush.msrb.mxu1 %v1444_v36 }
 0x7c2   :  { %1904 = vmatmul.msk.f32.vlgmr.msrb.gmra.mxu1 %vm1207_vm7, %v2989_v26 }
 0x7c3   :  { %1498 = vmatpush.msra.mxu1 %v1445_v55 }
 0x7c5   :  { %1499 = vmatpush.msra.mxu1 %v1444_v36 }
 0x7c7   :  { %1599 = vmatpush.msrb.mxu1 %v1564_v60 }
 0x7c9   :  { %1600 = vmatpush.msrb.mxu1 %v1563_v9 }
 0x7ca   :  { %1905 = vmatmul.msk.f32.vlgmr.msra.gmra.mxu1 %vm1207_vm7, %v2993_v31 }
 0x7cb   :  { %1601 = vmatpush.msrb.mxu1 %v1562_v42 }
 0x7cd   :  { %1602 = vmatpush.msrb.mxu1 %v1561_v29 }
 0x7cf   :  { %1603 = vmatpush.msrb.mxu1 %v1560_v45  ;;  %v1734_v45 = vld [vmem:[%s3280_s16 + $0x70] sm:$0xff] }
 0x7d0   :  { %1741 = vmatpush.msrb.mxu3 %v1734_v45 }
 0x7d1   :  { %1604 = vmatpush.msrb.mxu1 %v1559_v46  ;;  %v1730_v46 = vld [vmem:[%s3280_s16 + $0x50] sm:$0xff] }
 0x7d2   :  { %1742 = vmatpush.msrb.mxu3 %v1733_v7 }
 0x7d3   :  { %1605 = vmatpush.msrb.mxu1 %v1558_v50  ;;  %v1728_v50 = vld [vmem:[%s3280_s16 + $0x40] sm:$0xff] }
 0x7d5   :  { %1606 = vmatpush.msrb.mxu1 %v1557_v12  ;;  %v1727_v12 = vld [vmem:[%s3280_s16 + $0x38] sm:$0xff] }
 0x7d7   :  { %1607 = vmatpush.msrb.mxu1 %v1556_v24 }
 0x7d9   :  { %1608 = vmatpush.msrb.mxu1 %v1555_v44 }
 0x7db   :  { %1609 = vmatpush.msrb.mxu1 %v1554_v51 }
 0x7dd   :  { %1610 = vmatpush.msrb.mxu1 %v1553_v56  ;;  %v1725_v56 = vld [vmem:[%s3280_s16 + $0x28] sm:$0xff] }
 0x7df   :  { %1611 = vmatpush.msrb.mxu1 %v1552_v21  ;;  %v1721_v21 = vld [vmem:[%s3280_s16 + $0x8] sm:$0xff] }
 0x7e1   :  { %1612 = vmatpush.msrb.mxu1 %v1551_v8  ;;  %v1775_v8 = vld [vmem:[%s3282_s18 + $0x70] sm:$0xff] }
 0x7e3   :  { %1613 = vmatpush.msrb.mxu1 %v1550_v4  ;;  %v1771_v4 = vld [vmem:[%s3282_s18 + $0x50] sm:$0xff] }
 0x7e5   :  { %1614 = vmatpush.msrb.mxu1 %v1549_v49 }
 0x83f   :  { %v1478_v59 = vpop.f32.mrf.mxu1 }
 0x847   :  { %v1501_v25 = vpop.f32.mrf.mxu1 }
 0x848   :  { %v1504_v23 = vmax.f32 %v1478_v59, %v1501_v25  ;;  %v1726_v59 = vld [vmem:[%s3280_s16 + $0x30] sm:$0xff]  ;;  %v1724_v25 = vld [vmem:[%s3280_s16 + $0x20] sm:$0xff] }
 0x84a   :  { %v1506_v5 = vrot.slane %v1504_v23, 6  ;;  %v1722_v23 = vld [vmem:[%s3280_s16 + $0x10] sm:$0xff] }
 0x84c   :  { %v1508_v19 = vsel %vm1274_vm11, 0.0, %v1506_v5  ;;  %v1509_v58 = vsel %vm1274_vm11, %v1506_v5, 0.0  ;;  %v1776_v5 = vld [vmem:[%s3282_s18 + $0x78] sm:$0xff] }
 0x84d   :  { %v1522_v62 = vrot.slane %v1508_v19, 3  ;;  %v1523_v2 = vrot.slane %v1509_v58, 3  ;;  %v1512_v1 = vrot.slane %v1508_v19, 1  ;;  %v1513_v54 = vrot.slane %v1509_v58, 1 }
 0x84e   :  { %v1519_v18 = vrot.slane %v1509_v58, 2  ;;  %v1518_v15 = vrot.slane %v1508_v19, 2  ;;  %v1528_v36 = vrot.slane %v1508_v19, 4  ;;  %v1529_v30 = vrot.slane %v1509_v58, 4  ;;  %v1772_v58 = vld [vmem:[%s3282_s18 + $0x58] sm:$0xff] }
 0x84f   :  { %v1524_v11 = vsel %vm1305_vm12, %v1522_v62, %v1523_v2  ;;  %v1514_v13 = vsel %vm1285_vm13, %v1512_v1, %v1513_v54  ;;  %v1770_v62 = vld [vmem:[%s3282_s18 + $0x48] sm:$0xff]  ;;  %v1768_v2 = vld [vmem:[%s3282_s18 + $0x38] sm:$0xff]  ;;  %v1767_v1 = vld [vmem:[%s3282_s18 + $0x30] sm:$0xff] }
 0x850   :  { %1525 = vrot.lane.b32.xlu0 %v1524_v11, %s2086_s1  ;;  %1515 = vrot.lane.b32.xlu1 %v1514_v13, %s2086_s1  ;;  %v1520_v38 = vsel %vm1297_vm14, %v1518_v15, %v1519_v18  ;;  %v1530_v28 = vsel %vm1317_vm15, %v1528_v36, %v1529_v30  ;;  %v1765_v11 = vld [vmem:[%s3282_s18 + $0x20] sm:$0xff]  ;;  %v1764_v13 = vld [vmem:[%s3282_s18 + $0x18] sm:$0xff] }
 0x851   :  { %v1763_v36 = vld [vmem:[%s3282_s18 + $0x10] sm:$0xff]  ;;  %v1762_v30 = vld [vmem:[%s3282_s18 + $0x8] sm:$0xff] }
 0x8c2   :  { %v1526_v20 = vpop.permute.xlu0 %1525  ;;  %v1516_v17 = vpop.permute.xlu1 %1515 }
 0x8c3   :  { %v1532_v22 = vsel %vm633_vm9, %v1520_v38, %v1526_v20  ;;  %v1531_v55 = vsel %vm633_vm9, %v1508_v19, %v1516_v17  ;;  %v1773_v19 = vld [vmem:[%s3282_s18 + $0x60] sm:$0xff] }
 0x8c4   :  { %1595 = vmatmul.f32.vlgmr.msrb.gmra.mxu0 %v1531_v55  ;;  %1615 = vmatmul.f32.vlgmr.msrb.gmra.mxu1 %v1532_v22 }
 0x8c5   :  { %1781 = vmatpush.msrb.mxu0 %v1776_v5 }
 0x8c7   :  { %1782 = vmatpush.msrb.mxu0 %v1775_v8 }
 0x8c9   :  { %1783 = vmatpush.msrb.mxu0 %v1774_v35 }
 0x8cb   :  { %1784 = vmatpush.msrb.mxu0 %v1773_v19 }
 0x8cc   :  { %1906 = vmatmul.msk.f32.vlgmr.msra.gmra.mxu0 %vm633_vm9, %v1530_v28  ;;  %v1761_v28 = vld [vmem:[%s3282_s18] sm:$0xff] }
 0x8cd   :  { %1785 = vmatpush.msrb.mxu0 %v1772_v58 }
 0x8cf   :  { %1786 = vmatpush.msrb.mxu0 %v1771_v4 }
 0x8d1   :  { %1787 = vmatpush.msrb.mxu0 %v1770_v62 }
 0x8d3   :  { %1788 = vmatpush.msrb.mxu0 %v1769_v63 }
 0x8d5   :  { %1789 = vmatpush.msrb.mxu0 %v1768_v2 }
 0x8d7   :  { %1790 = vmatpush.msrb.mxu0 %v1767_v1 }
 0x8d9   :  { %1791 = vmatpush.msrb.mxu0 %v1766_v10 }
 0x8db   :  { %1792 = vmatpush.msrb.mxu0 %v1765_v11 }
 0x8dd   :  { %1793 = vmatpush.msrb.mxu0 %v1764_v13 }
 0x8df   :  { %1794 = vmatpush.msrb.mxu0 %v1763_v36 }
 0x8e1   :  { %1795 = vmatpush.msrb.mxu0 %v1762_v30 }
 0x8e3   :  { %1796 = vmatpush.msrb.mxu0 %v1761_v28 }
 0x941   :  { %v1596_v34 = vpop.f32.mrf.mxu0  ;;  %v1616_v37 = vpop.f32.mrf.mxu1 }
 0x942   :  { %v1597_v60 = vadd.f32 %v1957_v27, %v1596_v34  ;;  %v1805_v27 = vld [vmem:[%s3284_s20 + $0x18] sm:$0xff]  ;;  %v1958_v34 = vld [vmem:[%s3281_s17] ss:$0 sm:$0xff] }
 0x944   :  { %v1617_v9 = vadd.f32 %v1616_v37, %v1597_v60 }
 0x949   :  { %v1636_v42 = vpop.f32.mrf.mxu0 }
 0x94a   :  { %v1637_v43 = vadd.f32 %v1636_v42, %v1617_v9  ;;  %v1804_v42 = vld [vmem:[%s3284_s20 + $0x10] sm:$0xff] }
 0x94c   :  { %v1639_v29 = vmax.f32 %v1637_v43, 0.0  ;;  %v1803_v43 = vld [vmem:[%s3284_s20 + $0x8] sm:$0xff] }
 0x94e   :  { %1657 = vmatpush.msra.mxu1 %v1639_v29 }
 0x94f   :  { %1907 = vmatmul.msk.f32.vlgmr.msra.gmra.mxu1 %vm471_vm8, %v2989_v26  ;;  %v1732_v26 = vld [vmem:[%s3280_s16 + $0x60] sm:$0xff] }
 0x950   :  { %1679 = vmatpush.msrb.mxu1 %v1639_v29  ;;  %1743 = vmatpush.msrb.mxu3 %v1732_v26  ;;  %v1802_v29 = vld [vmem:[%s3284_s20] sm:$0xff]  ;;  %s1841_s20 = sshll.u32 %s3286_s22, 4  ;;  %s1842_s20 = int_to_ptr.hbm [resolvable:$true] %s1841_s20 }
 0x952   :  { %1825 = vmatpush.msra.mxu1 %v1805_v27 }
 0x954   :  { %1826 = vmatpush.msra.mxu1 %v1804_v42 }
 0x956   :  { %1827 = vmatpush.msra.mxu1 %v1803_v43 }
 0x957   :  { %1908 = vmatmul.msk.f32.vlgmr.msrb.gmra.mxu1 %vm471_vm8, %v2993_v31  ;;  %v1731_v31 = vld [vmem:[%s3280_s16 + $0x58] sm:$0xff]  ;;  %vm1700_vm8 = vcmask 785408  }
 0x958   :  { %1744 = vmatpush.msrb.mxu3 %v1731_v31  ;;  %1828 = vmatpush.msra.mxu1 %v1802_v29  ;;  %v1960_v31 = vld [vmem:[%s3285_s21] ss:$0 sm:$0xff] }
 0x95a   :  { %1745 = vmatpush.msrb.mxu3 %v1730_v46 }
 0x95c   :  { %1746 = vmatpush.msrb.mxu3 %v1729_v47 }
 0x95e   :  { %1747 = vmatpush.msrb.mxu3 %v1728_v50 }
 0x960   :  { %1748 = vmatpush.msrb.mxu3 %v1727_v12 }
 0x962   :  { %1749 = vmatpush.msrb.mxu3 %v1726_v59 }
 0x964   :  { %1750 = vmatpush.msrb.mxu3 %v1725_v56 }
 0x966   :  { %1751 = vmatpush.msrb.mxu3 %v1724_v25 }
 0x968   :  { %1752 = vmatpush.msrb.mxu3 %v1723_v32 }
 0x96a   :  { %1753 = vmatpush.msrb.mxu3 %v1722_v23 }
 0x96c   :  { %1754 = vmatpush.msrb.mxu3 %v1721_v21 }
 0x96e   :  { %1755 = vmatpush.msrb.mxu3 %v1720_v57 }
 0x9cc   :  { %v1659_v16 = vpop.f32.mrf.mxu1 }
 0x9d4   :  { %v1681_v61 = vpop.f32.mrf.mxu1 }
 0x9d5   :  { %v1684_v24 = vmax.f32 %v1659_v16, %v1681_v61 }
 0x9d7   :  { %1702 = vrot.lane.b32.xlu2 %v1684_v24, %s2081_s3  ;;  %v1686_v48 = vrot.slane %v1684_v24, 1  ;;  %v1690_v44 = vrot.slane %v1684_v24, 2  ;;  %v1694_v33 = vrot.slane %v1684_v24, 3 }
 0x9d9   :  { %v1942_v51 = vpack.i.bf16 %v1686_v48, %v1690_v44  ;;  %v1947_v41 = vpack.i.bf16 %v1690_v44, %v1694_v33 }
 0x9db   :  { %1943 = vrot.lane.b32.xlu1 %v1942_v51, %s2085_s10  ;;  %1948 = vrot.lane.b32.xlu0 %v1947_v41, %s2086_s1  ;;  %s1839_s10 = sshll.u32 %s2088_s2, 4  ;;  %s1840_s10 = int_to_ptr.vmem [resolvable:$true] %s1839_s10 }
 0x9df   :  { %1695 = vrot.lane.b32.xlu2 %v1694_v33, %s2081_s3 }
 0xa31   :  { %v1703_v54 = vpop.permute.xlu2 %1702 }
 0xa32   :  { %v1712_v40 = vsel %vm81_vm0, %v1703_v54, %v1686_v48 }
 0xa39   :  { %v1696_v15 = vpop.permute.xlu2 %1695 }
 0xa4d   :  { %v1944_v3 = vpop.permute.xlu1 %1943  ;;  %v1949_v6 = vpop.permute.xlu0 %1948 }
 0xa4e   :  { %v1946_v49 = vunpack.i.h.bf16 %v1944_v3  ;;  %v1945_v53 = vunpack.i.l.bf16 %v1944_v3  ;;  %v1951_v52 = vunpack.i.h.bf16 %v1949_v6  ;;  %v1950_v14 = vunpack.i.l.bf16 %v1949_v6 }
 0xa50   :  { %v1698_v39 = vsel %vm81_vm0, %v1684_v24, %v1946_v49  ;;  %v1713_v18 = vsel %vm633_vm9, %v1712_v40, %v1945_v53 }
 0xa51   :  { %v1699_v20 = vsel %vm633_vm9, %v1698_v39, %v1951_v52  ;;  %v1714_v38 = vsel %vm1700_vm8, %v1713_v18, %v1950_v14 }
 0xa52   :  { %v1716_v17 = vrot.slane %v1714_v38, 7  ;;  %v1701_v22 = vsel %vm1700_vm8, %v1699_v20, %v1696_v15 }
 0xa54   :  { %v1719_v55 = vsel %vm1718_vm3, %v1701_v22, %v1716_v17 }
 0xa55   :  { %1756 = vmatmul.f32.vlgmr.msrb.gmra.mxu3 %v1719_v55 }
 0xad8   :  { %v1757_v60 = vpop.f32.mrf.mxu3 }
 0xad9   :  { %v1758_v37 = vadd.f32 %v1958_v34, %v1757_v60 }
 0xadb   :  { %v1760_v9 = vmax.f32 %v1758_v37, 0.0 }
 0xadd   :  { %1797 = vmatmul.f32.vlgmr.msrb.gmra.mxu0 %v1760_v9 }
 0xb5a   :  { %v1798_v45 = vpop.f32.mrf.mxu0 }
 0xb5b   :  { %v1799_v7 = vadd.f32 %v1959_v0, %v1798_v45 }
 0xb5d   :  { %v1801_v26 = vmax.f32 %v1799_v7, 0.0 }
 0xb5f   :  { %1909 = vmatmul.msk.f32.vlgmr.msra.gmra.mxu1 %vm81_vm0, %v1801_v26 }
 0xbdc   :  { %v1830_v46 = vpop.f32.mrf.mxu1 }
 0xbdd   :  { %v1831_v47 = vadd.f32 %v1960_v31, %v1830_v46 }
 0xbdf   :  { %1833 = vst [vmem:[#allocation2] sm:$0x3] %v1831_v47 }
 0xbe0   :  { %1844 = dma.vmem_to_hbm [thread:$0]  %s1840_s10, 32, %s1842_s20, [#allocation3]  }
 0xbe1   :  { %2075 = dma.done.wait [#allocation3], 32  }
 0xbe2   :  { %2076 = vsyncadd [#allocation3], 4294967264 }
 0xbe3   :  { %1849 = vsyncpa [#allocation3], 1 }

</bundles_post_ra>
